<compile_context>
chip_gen: v6e
topology: v6e:2x2x1
jax: 0.10.0
libtpu: 0.0.40
codegen_flags: <defaults>
</compile_context>

<pallas_src>
import functools

import numpy as np
import jax
import jax.numpy as jnp
from jax import lax
from jax.experimental import pallas as pl
from jax.experimental.pallas import tpu as pltpu


def _ru(x, m):
    """Round x up to a multiple of m."""
    return ((x + m - 1) // m) * m


class _Layout:
    """128-lane-aligned column layout of the fused weight/bias/output slabs."""

    def __init__(self, H, D):
        self.H, self.D = H, D
        FH, FD = _ru(H, 128), _ru(D, 128)
        self.FH, self.FD = FH, FD
        # h-projection slab columns: [k | whr | whz | whn | beta], each field 128-aligned.
        self.k, self.hr, self.hz = 0, FD, FD + FH
        self.hn, self.beta = FD + 2 * FH, FD + 3 * FH
        self.col_h = FD + 3 * FH + 128
        # r-projection slab (GRU input side): [ir | iz | in]
        self.ir, self.iz, self.inn = 0, FH, 2 * FH
        self.col_r = 3 * FH
        # h_o-projection slab: [e | v]
        self.e, self.v = 0, FD
        self.col_o = 2 * FD
        # packed output slab: [h | k | r], each field 128-aligned.
        self.o_h, self.o_k, self.o_r = 0, FH, FH + FD
        self.out_w = FH + 2 * FD
        # slab extents
        self.w_rows = _ru(max(H, D), 8)
        self.w_cols = self.col_h + self.col_r + self.col_o
        self.b_cols = max(self.col_h, self.col_r, self.col_o)


# -----------------------------------------------------------------------------
# Kernel (one batch block; `steps` cell applications via in-kernel fori_loop)
# -----------------------------------------------------------------------------
def _ntm_kernel(h_in_ref, C_in_ref, W_ref, B_ref, hkr_out_ref, C_out_ref, *, L, steps):
    f32 = jnp.float32
    H, D = L.H, L.D
    NB = h_in_ref.shape[0]

    # ---- loop-invariant: weight sub-slabs + bias rows, loaded once per batch block ----
    Wh = W_ref[0:H, 0:L.col_h]
    Wr = W_ref[0:D, L.col_h:L.col_h + L.col_r]
    Wo = W_ref[0:H, L.col_h + L.col_r:L.col_h + L.col_r + L.col_o]
    bh = B_ref[0:1, 0:L.col_h]
    br = B_ref[1:2, 0:L.col_r]
    bo = B_ref[2:3, 0:L.col_o]
    wdt = Wh.dtype

    # Memory state lives directly in the resident output block (no scratch copy).
    C_out_ref[...] = C_in_ref[...]

    def step(_, carry):
        h, _, _ = carry                      # (NB, H)
        C = C_out_ref[...]                   # (NB, M, D) resident state

        # ---- fused h-projection: k | GRU hidden-side gates | beta logit ----
        Ph = jnp.dot(h.astype(wdt), Wh, preferred_element_type=f32) + bh   # (NB, col_h)
        k = Ph[:, L.k:L.k + D]
        hr = Ph[:, L.hr:L.hr + H]
        hz = Ph[:, L.hz:L.hz + H]
        hn = Ph[:, L.hn:L.hn + H]            # h @ whn + b_hn
        bpre = Ph[:, L.beta:L.beta + 1]      # (NB, 1)
        # beta = 1 + softplus(beta_pre)  (identical to the PyTorch clamp/log1p form)
        beta = 1.0 + jnp.maximum(bpre, 0.0) + jnp.log1p(jnp.exp(-jnp.abs(bpre)))

        # ---- cosine similarity + softmax attention; slot axis M stays on sublanes ----
        k3 = k[:, None, :]                                        # (NB, 1, D)
        dots = jnp.sum(C * k3, axis=2, keepdims=True)             # (NB, M, 1)
        c_sq = jnp.sum(C * C, axis=2, keepdims=True)              # (NB, M, 1)
        k_sq = jnp.sum(k3 * k3, axis=2, keepdims=True)            # (NB, 1, 1)
        # dots / max(||C||*||k||, 1e-8) == dots * rsqrt(max(||C||^2*||k||^2, 1e-16))
        s = dots * lax.rsqrt(jnp.maximum(c_sq * k_sq, 1e-16))     # (NB, M, 1)
        logits = s * beta[:, :, None]
        logits = logits - jnp.max(logits, axis=1, keepdims=True)  # sublane reduction
        ex = jnp.exp(logits)
        inv = pl.reciprocal(jnp.sum(ex, axis=1, keepdims=True), approx=True)
        w = ex * inv                                              # (NB, M, 1)
        r = jnp.sum(w * C, axis=1)                                # (NB, D)

        # ---- fused GRU input-side projection + gates ----
        Pr = jnp.dot(r.astype(wdt), Wr, preferred_element_type=f32) + br   # (NB, col_r)
        rg = jax.nn.sigmoid(Pr[:, L.ir:L.ir + H] + hr)
        zg = jax.nn.sigmoid(Pr[:, L.iz:L.iz + H] + hz)
        ng = jnp.tanh(Pr[:, L.inn:L.inn + H] + rg * hn)
        h_new = (1.0 - zg) * ng + zg * h                          # (NB, H)

        # ---- fused erase/add projection + memory write ----
        Po = jnp.dot(h_new.astype(wdt), Wo, preferred_element_type=f32) + bo
        e = jax.nn.sigmoid(Po[:, L.e:L.e + D])                    # (NB, D)
        v = Po[:, L.v:L.v + D]                                    # (NB, D)
        # C*(1 - w⊗e) + w⊗v == C - w⊗(C*e - v); w broadcasts over lanes, no relayout.
        C_out_ref[...] = C - w * (C * e[:, None, :] - v[:, None, :])
        return h_new, k, r

    init = (h_in_ref[...],
            jnp.zeros((NB, D), f32),
            jnp.zeros((NB, D), f32))
    h_fin, k_fin, r_fin = lax.fori_loop(0, steps, step, init, unroll=(steps <= 8))

    # Final-step outputs, written once with direct slice stores at 128-aligned offsets.
    hkr_out_ref[...] = jnp.zeros_like(hkr_out_ref)
    hkr_out_ref[:, L.o_h:L.o_h + H] = h_fin
    hkr_out_ref[:, L.o_k:L.o_k + D] = k_fin
    hkr_out_ref[:, L.o_r:L.o_r + D] = r_fin


# -----------------------------------------------------------------------------
# Wrapper
# -----------------------------------------------------------------------------
def ntm_cell_forward(h_o_prev, C, W_all, B_all, steps=1, block_n=128):
    """Runs `steps` NTMCell applications inside one pallas_call.

    steps=1 reproduces the PyTorch module's forward exactly.  The batch is zero-padded to a
    sublane-aligned batch block (NB rows); the grid iterates over batch blocks in parallel
    (two TensorCores on v7x) while the recurrence runs as an in-kernel fori_loop.
    block_n: batch-block rows — 128 matches the v5e MXU, use 256 on v6e/v7x for big N.
    """
    N, H = h_o_prev.shape
    _, M, D = C.shape
    L = _Layout(H, D)

    block_n = _ru(max(int(block_n), 8), 8)
    NB = min(_ru(N, 8), block_n)
    N_pad = _ru(N, NB)
    if N_pad != N:
        h_o_prev = jnp.pad(h_o_prev, ((0, N_pad - N), (0, 0)))
        C = jnp.pad(C, ((0, N_pad - N), (0, 0), (0, 0)))
    n_blocks = N_pad // NB

    kernel = functools.partial(_ntm_kernel, L=L, steps=int(steps))
    hkr, C_new = pl.pallas_call(
        kernel,
        out_shape=(
            jax.ShapeDtypeStruct((N_pad, L.out_w), jnp.float32),   # [h | k | r] slab
            jax.ShapeDtypeStruct((N_pad, M, D), jnp.float32),      # updated C
        ),
        grid_spec=pltpu.PrefetchScalarGridSpec(
            num_scalar_prefetch=0,
            grid=(n_blocks,),
            in_specs=[
                pl.BlockSpec((NB, H), lambda b: (b, 0)),
                pl.BlockSpec((NB, M, D), lambda b: (b, 0, 0)),
                pl.BlockSpec(W_all.shape, lambda b: (0, 0)),
                pl.BlockSpec(B_all.shape, lambda b: (0, 0)),
            ],
            out_specs=(
                pl.BlockSpec((NB, L.out_w), lambda b: (b, 0)),
                pl.BlockSpec((NB, M, D), lambda b: (b, 0, 0)),
            ),
        ),
        compiler_params=pltpu.CompilerParams(
            dimension_semantics=("parallel",)),      # batch blocks are independent
    )(h_o_prev, C, W_all, B_all)

    h_new = hkr[:N, L.o_h:L.o_h + H]
    k = hkr[:N, L.o_k:L.o_k + D]
    r = hkr[:N, L.o_r:L.o_r + D]
    return h_new, C_new[:N], k, r


# -----------------------------------------------------------------------------
# Parameter init / packing
# -----------------------------------------------------------------------------
def _uniform(key, shape, bound):
    return jax.random.uniform(key, shape, jnp.float32, -bound, bound)


def init_params(key, dim_h_o, dim_C2_2):
    """Deterministic init mirroring PyTorch Linear / GRUCell default init.

    All weights are stored pre-transposed to (in, out) so the kernel computes x @ W + b.
    """
    H, D = dim_h_o, dim_C2_2
    ks = jax.random.split(key, 20)
    lin_b = 1.0 / np.sqrt(H)       # Linear layers: fan_in = dim_h_o
    gru_b = 1.0 / np.sqrt(H)       # GRUCell: 1/sqrt(hidden_size)

    # GRU biases: r/z gates fuse bias_ih + bias_hh; n-gate keeps them split.
    b_ir, b_hr = _uniform(ks[12], (1, H), gru_b), _uniform(ks[13], (1, H), gru_b)
    b_iz, b_hz = _uniform(ks[14], (1, H), gru_b), _uniform(ks[15], (1, H), gru_b)
    b_in, b_hn = _uniform(ks[16], (1, H), gru_b), _uniform(ks[17], (1, H), gru_b)

    return dict(
        wk=_uniform(ks[0], (H, D), lin_b), bk=_uniform(ks[1], (1, D), lin_b),
        wb=_uniform(ks[2], (H, 1), lin_b), bb=_uniform(ks[3], (1, 1), lin_b),
        we=_uniform(ks[4], (H, D), lin_b), be=_uniform(ks[5], (1, D), lin_b),
        wv=_uniform(ks[6], (H, D), lin_b), bv=_uniform(ks[7], (1, D), lin_b),
        wir=_uniform(ks[8], (D, H), gru_b), wiz=_uniform(ks[9], (D, H), gru_b),
        win=_uniform(ks[10], (D, H), gru_b),
        whr=_uniform(ks[11], (H, H), gru_b), whz=_uniform(ks[18], (H, H), gru_b),
        whn=_uniform(ks[19], (H, H), gru_b),
        br=b_ir + b_hr, bz=b_iz + b_hz, bin=b_in, bhn=b_hn,
    )


def pack_params(p, weight_dtype=jnp.float32):
    """Pack all weights/biases into two slabs (W_all, B_all) host-side, once.

    Every logical field starts on a 128-lane boundary so the in-kernel sub-slices of the
    fused matmul outputs never require lane shifts.  Biases stay f32; weights may be bf16.
    """
    H, D = p["wk"].shape
    L = _Layout(H, D)
    f = lambda a: np.asarray(a, np.float32)

    W_all = np.zeros((L.w_rows, L.w_cols), np.float32)
    # h-projection slab: [k | whr | whz | whn | beta]
    W_all[:H, L.k:L.k + D] = f(p["wk"])
    W_all[:H, L.hr:L.hr + H] = f(p["whr"])
    W_all[:H, L.hz:L.hz + H] = f(p["whz"])
    W_all[:H, L.hn:L.hn + H] = f(p["whn"])
    W_all[:H, L.beta:L.beta + 1] = f(p["wb"])
    # r-projection slab (GRU input side): [ir | iz | in]
    c0 = L.col_h
    W_all[:D, c0 + L.ir:c0 + L.ir + H] = f(p["wir"])
    W_all[:D, c0 + L.iz:c0 + L.iz + H] = f(p["wiz"])
    W_all[:D, c0 + L.inn:c0 + L.inn + H] = f(p["win"])
    # output projection slab: [e | v]
    c1 = L.col_h + L.col_r
    W_all[:H, c1 + L.e:c1 + L.e + D] = f(p["we"])
    W_all[:H, c1 + L.v:c1 + L.v + D] = f(p["wv"])

    B_all = np.zeros((8, L.b_cols), np.float32)
    # row 0: h-projection biases (bk, b_hn on the hidden n-gate term, bb)
    B_all[0, L.k:L.k + D] = f(p["bk"])[0]
    B_all[0, L.hn:L.hn + H] = f(p["bhn"])[0]
    B_all[0, L.beta:L.beta + 1] = f(p["bb"])[0]
    # row 1: r-projection biases (r/z gates carry the fused ih+hh bias; n-gate carries b_in)
    B_all[1, L.ir:L.ir + H] = f(p["br"])[0]
    B_all[1, L.iz:L.iz + H] = f(p["bz"])[0]
    B_all[1, L.inn:L.inn + H] = f(p["bin"])[0]
    # row 2: output projection biases
    B_all[2, L.e:L.e + D] = f(p["be"])[0]
    B_all[2, L.v:L.v + D] = f(p["bv"])[0]

    return jnp.asarray(W_all, weight_dtype), jnp.asarray(B_all, jnp.float32)


# -----------------------------------------------------------------------------
# Pure-JAX reference (unfused, mirrors the PyTorch math)
# -----------------------------------------------------------------------------
def ntm_cell_reference(h, C, p):
    k = h @ p["wk"] + p["bk"]
    bp = h @ p["wb"] + p["bb"]
    beta = (jnp.log1p(jnp.exp(jnp.minimum(bp, 0.0))) + jnp.maximum(bp, 0.0)
            + jnp.log1p(jnp.exp(-jnp.maximum(bp, 0.0))) + (1.0 - np.log(2.0)))
    dots = jnp.einsum("nmd,nd->nm", C, k)
    denom = jnp.maximum(jnp.linalg.norm(C, axis=2) * jnp.linalg.norm(k, axis=1, keepdims=True), 1e-8)
    w = jax.nn.softmax((dots / denom) * beta, axis=1)
    r = jnp.einsum("nm,nmd->nd", w, C)
    rg = jax.nn.sigmoid(r @ p["wir"] + h @ p["whr"] + p["br"])
    zg = jax.nn.sigmoid(r @ p["wiz"] + h @ p["whz"] + p["bz"])
    ng = jnp.tanh(r @ p["win"] + p["bin"] + rg * (h @ p["whn"] + p["bhn"]))
    h_new = (1.0 - zg) * ng + zg * h
    e = jax.nn.sigmoid(h_new @ p["we"] + p["be"])
    v = h_new @ p["wv"] + p["bv"]
    C_new = C * (1.0 - w[:, :, None] * e[:, None, :]) + w[:, :, None] * v[:, None, :]
    return h_new, C_new, k, r


if __name__ == "__main__":
    # Small synthetic config: dim_h_o=32, dim_C2_1=16 slots, dim_C2_2=32 features.
    N, dim_h_o, dim_C2_1, dim_C2_2 = 2, 32, 16, 32

    key = jax.random.PRNGKey(0)
    k_h, k_C, k_p, k_h2, k_C2 = jax.random.split(key, 5)
    h_o_prev = jax.random.normal(k_h, (N, dim_h_o), jnp.float32)
    C0 = jax.random.normal(k_C, (N, dim_C2_1, dim_C2_2), jnp.float32)
    params = init_params(k_p, dim_h_o, dim_C2_2)
    W_all, B_all = pack_params(params)

    # --- single step: matches the PyTorch module forward ---
    # (tolerance is slightly looser than an exact-divide kernel because the softmax
    #  normalization uses the EUP approximate reciprocal, per the perf review)
    outs = ntm_cell_forward(h_o_prev, C0, W_all, B_all, steps=1)
    jax.block_until_ready(outs)
    ref = ntm_cell_reference(h_o_prev, C0, params)
    for got, want in zip(outs, ref):
        np.testing.assert_allclose(np.asarray(got), np.asarray(want), rtol=1e-2, atol=1e-2)

    # --- multiple batch blocks (parallel grid axis) + T steps of in-kernel recurrence ---
    N2, T = 16, 3
    h2 = jax.random.normal(k_h2, (N2, dim_h_o), jnp.float32)
    C2 = jax.random.normal(k_C2, (N2, dim_C2_1, dim_C2_2), jnp.float32)
    outs2 = ntm_cell_forward(h2, C2, W_all, B_all, steps=T, block_n=8)   # 2 parallel blocks
    jax.block_until_ready(outs2)
    h_r, C_r, k_r, r_r = h2, C2, None, None
    for _ in range(T):
        h_r, C_r, k_r, r_r = ntm_cell_reference(h_r, C_r, params)
    for got, want in zip(outs2, (h_r, C_r, k_r, r_r)):
        np.testing.assert_allclose(np.asarray(got), np.asarray(want), rtol=2e-2, atol=2e-2)

    print("KERNEL_OK")
</pallas_src>

<mosaic_0001>
module attributes {stable_mosaic.version = 11 : i64} {
  func.func @_ntm_kernel(%arg0: i32, %arg1: memref<8x32xf32, #tpu.memory_space<vmem>>, %arg2: memref<8x16x32xf32, #tpu.memory_space<vmem>>, %arg3: memref<32x1280xf32, #tpu.memory_space<vmem>>, %arg4: memref<8x640xf32, #tpu.memory_space<vmem>>, %arg5: memref<8x384xf32, #tpu.memory_space<vmem>>, %arg6: memref<8x16x32xf32, #tpu.memory_space<vmem>>) attributes {dimension_semantics = [#tpu.dimension_semantics<parallel>], iteration_bounds = array<i64: 1>, scalar_prefetch = 0 : i64, scratch_operands = 0 : i64, tpu.core_type = #tpu.core_type<tc>, window_params = [{transform_indices = @transform_0, window_bounds = array<i64: 8, 32>}, {transform_indices = @transform_1, window_bounds = array<i64: 8, 16, 32>}, {pipeline_mode = #tpu.pipeline_mode<synchronous>, transform_indices = @transform_2, window_bounds = array<i64: 32, 1280>}, {pipeline_mode = #tpu.pipeline_mode<synchronous>, transform_indices = @transform_3, window_bounds = array<i64: 8, 640>}, {transform_indices = @transform_4, window_bounds = array<i64: 8, 384>}, {transform_indices = @transform_5, window_bounds = array<i64: 8, 16, 32>}]} {
    %c0 = arith.constant 0 : index
    %c0_0 = arith.constant 0 : index
    %0 = vector.load %arg3[%c0, %c0_0] : memref<32x1280xf32, #tpu.memory_space<vmem>>, vector<32x640xf32>
    %c0_1 = arith.constant 0 : index
    %c640 = arith.constant 640 : index
    %1 = vector.load %arg3[%c0_1, %c640] : memref<32x1280xf32, #tpu.memory_space<vmem>>, vector<32x384xf32>
    %c0_2 = arith.constant 0 : index
    %c1024 = arith.constant 1024 : index
    %2 = vector.load %arg3[%c0_2, %c1024] : memref<32x1280xf32, #tpu.memory_space<vmem>>, vector<32x256xf32>
    %c0_3 = arith.constant 0 : index
    %c0_4 = arith.constant 0 : index
    %3 = vector.load %arg4[%c0_3, %c0_4] : memref<8x640xf32, #tpu.memory_space<vmem>>, vector<1x640xf32>
    %c1 = arith.constant 1 : index
    %c0_5 = arith.constant 0 : index
    %4 = vector.load %arg4[%c1, %c0_5] : memref<8x640xf32, #tpu.memory_space<vmem>>, vector<1x384xf32>
    %c2 = arith.constant 2 : index
    %c0_6 = arith.constant 0 : index
    %5 = vector.load %arg4[%c2, %c0_6] : memref<8x640xf32, #tpu.memory_space<vmem>>, vector<1x256xf32>
    %c0_7 = arith.constant 0 : index
    %c0_8 = arith.constant 0 : index
    %c0_9 = arith.constant 0 : index
    %6 = vector.load %arg2[%c0_7, %c0_8, %c0_9] : memref<8x16x32xf32, #tpu.memory_space<vmem>>, vector<8x16x32xf32>
    %c0_10 = arith.constant 0 : index
    %c0_11 = arith.constant 0 : index
    %c0_12 = arith.constant 0 : index
    %7 = vector.load %arg6[%c0_10, %c0_11, %c0_12] : memref<8x16x32xf32, #tpu.memory_space<vmem>>, vector<8x16x32xf32>
    tpu.vector_store %arg6[%c0_10, %c0_11, %c0_12], %6 {strides = array<i32>} : memref<8x16x32xf32, #tpu.memory_space<vmem>>, vector<8x16x32xf32>,
    %c0_13 = arith.constant 0 : index
    %c0_14 = arith.constant 0 : index
    %8 = vector.load %arg1[%c0_13, %c0_14] : memref<8x32xf32, #tpu.memory_space<vmem>>, vector<8x32xf32>
    %cst = arith.constant 0.000000e+00 : f32
    %9 = vector.broadcast %cst : f32 to vector<8x32xf32>
    %cst_15 = arith.constant 0.000000e+00 : f32
    %10 = vector.broadcast %cst_15 : f32 to vector<8x32xf32>
    %c0_i32 = arith.constant 0 : i32
    %c0_16 = arith.constant 0 : index
    %c0_17 = arith.constant 0 : index
    %c0_18 = arith.constant 0 : index
    %11 = vector.load %arg6[%c0_16, %c0_17, %c0_18] : memref<8x16x32xf32, #tpu.memory_space<vmem>>, vector<8x16x32xf32>
    %cst_19 = arith.constant dense<0.000000e+00> : vector<8x640xf32>
    %12 = tpu.matmul %8, %0, %cst_19 {dimension_numbers = #tpu.dot_dimension_numbers<[1], [0], [0], [1], [0, 0, 1, 1], [], []>} : vector<8x32xf32>, vector<32x640xf32>, vector<8x640xf32> -> vector<8x640xf32>
    %13 = vector.broadcast %3 : vector<1x640xf32> to vector<8x640xf32>
    %14 = arith.addf %12, %13 : vector<8x640xf32>
    %15 = vector.extract_strided_slice %14 {offsets = [0, 0], sizes = [8, 32], strides = [1, 1]} : vector<8x640xf32> to vector<8x32xf32>
    %16 = vector.extract_strided_slice %14 {offsets = [0, 128], sizes = [8, 32], strides = [1, 1]} : vector<8x640xf32> to vector<8x32xf32>
    %17 = vector.extract_strided_slice %14 {offsets = [0, 256], sizes = [8, 32], strides = [1, 1]} : vector<8x640xf32> to vector<8x32xf32>
    %18 = vector.extract_strided_slice %14 {offsets = [0, 384], sizes = [8, 32], strides = [1, 1]} : vector<8x640xf32> to vector<8x32xf32>
    %19 = vector.extract_strided_slice %14 {offsets = [0, 512], sizes = [8, 1], strides = [1, 1]} : vector<8x640xf32> to vector<8x1xf32>
    %cst_20 = arith.constant 0.000000e+00 : f32
    %20 = vector.broadcast %cst_20 : f32 to vector<8x1xf32>
    %21 = arith.maximumf %19, %20 : vector<8x1xf32>
    %cst_21 = arith.constant 1.000000e+00 : f32
    %22 = vector.broadcast %cst_21 : f32 to vector<8x1xf32>
    %23 = arith.addf %22, %21 : vector<8x1xf32>
    %24 = math.absf %19 : vector<8x1xf32>
    %cst_22 = arith.constant 0.000000e+00 : f32
    %25 = vector.broadcast %cst_22 : f32 to vector<8x1xf32>
    %26 = arith.subf %25, %24 : vector<8x1xf32>
    %27 = math.exp %26 : vector<8x1xf32>
    %28 = math.log1p %27 : vector<8x1xf32>
    %29 = arith.addf %23, %28 : vector<8x1xf32>
    %30 = vector.shape_cast %15 : vector<8x32xf32> to vector<8x1x32xf32>
    %31 = vector.broadcast %30 : vector<8x1x32xf32> to vector<8x16x32xf32>
    %32 = arith.mulf %11, %31 : vector<8x16x32xf32>
    %cst_23 = arith.constant dense<0.000000e+00> : vector<8x16xf32>
    %33 = vector.multi_reduction <add>, %32, %cst_23 [2] : vector<8x16x32xf32> to vector<8x16xf32>
    %34 = vector.shape_cast %33 : vector<8x16xf32> to vector<8x16x1xf32>
    %35 = arith.mulf %11, %11 : vector<8x16x32xf32>
    %cst_24 = arith.constant dense<0.000000e+00> : vector<8x16xf32>
    %36 = vector.multi_reduction <add>, %35, %cst_24 [2] : vector<8x16x32xf32> to vector<8x16xf32>
    %37 = vector.shape_cast %36 : vector<8x16xf32> to vector<8x16x1xf32>
    %38 = arith.mulf %30, %30 : vector<8x1x32xf32>
    %cst_25 = arith.constant dense<0.000000e+00> : vector<8x1xf32>
    %39 = vector.multi_reduction <add>, %38, %cst_25 [2] : vector<8x1x32xf32> to vector<8x1xf32>
    %40 = vector.shape_cast %39 : vector<8x1xf32> to vector<8x1x1xf32>
    %41 = vector.broadcast %40 : vector<8x1x1xf32> to vector<8x16x1xf32>
    %42 = arith.mulf %37, %41 : vector<8x16x1xf32>
    %cst_26 = arith.constant 1.000000e-16 : f32
    %43 = vector.broadcast %cst_26 : f32 to vector<8x16x1xf32>
    %44 = arith.maximumf %42, %43 : vector<8x16x1xf32>
    %45 = math.rsqrt %44 : vector<8x16x1xf32>
    %46 = arith.mulf %34, %45 : vector<8x16x1xf32>
    %47 = vector.shape_cast %29 : vector<8x1xf32> to vector<8x1x1xf32>
    %48 = vector.broadcast %47 : vector<8x1x1xf32> to vector<8x16x1xf32>
    %49 = arith.mulf %46, %48 : vector<8x16x1xf32>
    %cst_27 = arith.constant dense<0xFF800000> : vector<8x1xf32>
    %50 = vector.multi_reduction <maximumf>, %49, %cst_27 [1] : vector<8x16x1xf32> to vector<8x1xf32>
    %51 = vector.shape_cast %50 : vector<8x1xf32> to vector<8x1x1xf32>
    %52 = vector.broadcast %51 : vector<8x1x1xf32> to vector<8x16x1xf32>
    %53 = arith.subf %49, %52 : vector<8x16x1xf32>
    %54 = math.exp %53 : vector<8x16x1xf32>
    %cst_28 = arith.constant dense<0.000000e+00> : vector<8x1xf32>
    %55 = vector.multi_reduction <add>, %54, %cst_28 [1] : vector<8x16x1xf32> to vector<8x1xf32>
    %56 = vector.shape_cast %55 : vector<8x1xf32> to vector<8x1x1xf32>
    %57 = tpu.reciprocal %56 {approx = true} : vector<8x1x1xf32> -> vector<8x1x1xf32>
    %58 = vector.broadcast %57 : vector<8x1x1xf32> to vector<8x16x1xf32>
    %59 = arith.mulf %54, %58 : vector<8x16x1xf32>
    %60 = vector.broadcast %59 : vector<8x16x1xf32> to vector<8x16x32xf32>
    %61 = arith.mulf %60, %11 : vector<8x16x32xf32>
    %cst_29 = arith.constant dense<0.000000e+00> : vector<8x32xf32>
    %62 = vector.multi_reduction <add>, %61, %cst_29 [1] : vector<8x16x32xf32> to vector<8x32xf32>
    %cst_30 = arith.constant dense<0.000000e+00> : vector<8x384xf32>
    %63 = tpu.matmul %62, %1, %cst_30 {dimension_numbers = #tpu.dot_dimension_numbers<[1], [0], [0], [1], [0, 0, 1, 1], [], []>} : vector<8x32xf32>, vector<32x384xf32>, vector<8x384xf32> -> vector<8x384xf32>
    %64 = vector.broadcast %4 : vector<1x384xf32> to vector<8x384xf32>
    %65 = arith.addf %63, %64 : vector<8x384xf32>
    %66 = vector.extract_strided_slice %65 {offsets = [0, 0], sizes = [8, 32], strides = [1, 1]} : vector<8x384xf32> to vector<8x32xf32>
    %67 = arith.addf %66, %16 : vector<8x32xf32>
    %68 = arith.negf %67 : vector<8x32xf32>
    %69 = math.exp %68 : vector<8x32xf32>
    %cst_31 = arith.constant 1.000000e+00 : f32
    %70 = vector.broadcast %cst_31 : f32 to vector<8x32xf32>
    %71 = arith.addf %70, %69 : vector<8x32xf32>
    %72 = arith.divf %70, %71 : vector<8x32xf32>
    %73 = vector.extract_strided_slice %65 {offsets = [0, 128], sizes = [8, 32], strides = [1, 1]} : vector<8x384xf32> to vector<8x32xf32>
    %74 = arith.addf %73, %17 : vector<8x32xf32>
    %75 = arith.negf %74 : vector<8x32xf32>
    %76 = math.exp %75 : vector<8x32xf32>
    %cst_32 = arith.constant 1.000000e+00 : f32
    %77 = vector.broadcast %cst_32 : f32 to vector<8x32xf32>
    %78 = arith.addf %77, %76 : vector<8x32xf32>
    %79 = arith.divf %77, %78 : vector<8x32xf32>
    %80 = vector.extract_strided_slice %65 {offsets = [0, 256], sizes = [8, 32], strides = [1, 1]} : vector<8x384xf32> to vector<8x32xf32>
    %81 = arith.mulf %72, %18 : vector<8x32xf32>
    %82 = arith.addf %80, %81 : vector<8x32xf32>
    %83 = math.tanh %82 : vector<8x32xf32>
    %cst_33 = arith.constant 1.000000e+00 : f32
    %84 = vector.broadcast %cst_33 : f32 to vector<8x32xf32>
    %85 = arith.subf %84, %79 : vector<8x32xf32>
    %86 = arith.mulf %85, %83 : vector<8x32xf32>
    %87 = arith.mulf %79, %8 : vector<8x32xf32>
    %88 = arith.addf %86, %87 : vector<8x32xf32>
    %cst_34 = arith.constant dense<0.000000e+00> : vector<8x256xf32>
    %89 = tpu.matmul %88, %2, %cst_34 {dimension_numbers = #tpu.dot_dimension_numbers<[1], [0], [0], [1], [0, 0, 1, 1], [], []>} : vector<8x32xf32>, vector<32x256xf32>, vector<8x256xf32> -> vector<8x256xf32>
    %90 = vector.broadcast %5 : vector<1x256xf32> to vector<8x256xf32>
    %91 = arith.addf %89, %90 : vector<8x256xf32>
    %92 = vector.extract_strided_slice %91 {offsets = [0, 0], sizes = [8, 32], strides = [1, 1]} : vector<8x256xf32> to vector<8x32xf32>
    %93 = arith.negf %92 : vector<8x32xf32>
    %94 = math.exp %93 : vector<8x32xf32>
    %cst_35 = arith.constant 1.000000e+00 : f32
    %95 = vector.broadcast %cst_35 : f32 to vector<8x32xf32>
    %96 = arith.addf %95, %94 : vector<8x32xf32>
    %97 = arith.divf %95, %96 : vector<8x32xf32>
    %98 = vector.extract_strided_slice %91 {offsets = [0, 128], sizes = [8, 32], strides = [1, 1]} : vector<8x256xf32> to vector<8x32xf32>
    %99 = vector.shape_cast %97 : vector<8x32xf32> to vector<8x1x32xf32>
    %100 = vector.broadcast %99 : vector<8x1x32xf32> to vector<8x16x32xf32>
    %101 = arith.mulf %11, %100 : vector<8x16x32xf32>
    %102 = vector.shape_cast %98 : vector<8x32xf32> to vector<8x1x32xf32>
    %103 = vector.broadcast %102 : vector<8x1x32xf32> to vector<8x16x32xf32>
    %104 = arith.subf %101, %103 : vector<8x16x32xf32>
    %105 = vector.broadcast %59 : vector<8x16x1xf32> to vector<8x16x32xf32>
    %106 = arith.mulf %105, %104 : vector<8x16x32xf32>
    %107 = arith.subf %11, %106 : vector<8x16x32xf32>
    %c0_36 = arith.constant 0 : index
    %c0_37 = arith.constant 0 : index
    %c0_38 = arith.constant 0 : index
    %108 = vector.load %arg6[%c0_36, %c0_37, %c0_38] : memref<8x16x32xf32, #tpu.memory_space<vmem>>, vector<8x16x32xf32>
    tpu.vector_store %arg6[%c0_36, %c0_37, %c0_38], %107 {strides = array<i32>} : memref<8x16x32xf32, #tpu.memory_space<vmem>>, vector<8x16x32xf32>,
    %cst_39 = arith.constant 0.000000e+00 : f32
    %109 = vector.broadcast %cst_39 : f32 to vector<8x384xf32>
    %c0_40 = arith.constant 0 : index
    %c0_41 = arith.constant 0 : index
    %110 = vector.load %arg5[%c0_40, %c0_41] : memref<8x384xf32, #tpu.memory_space<vmem>>, vector<8x384xf32>
    tpu.vector_store %arg5[%c0_40, %c0_41], %109 {strides = array<i32>} : memref<8x384xf32, #tpu.memory_space<vmem>>, vector<8x384xf32>,
    %c0_42 = arith.constant 0 : index
    %c0_43 = arith.constant 0 : index
    %111 = vector.load %arg5[%c0_42, %c0_43] : memref<8x384xf32, #tpu.memory_space<vmem>>, vector<8x32xf32>
    tpu.vector_store %arg5[%c0_42, %c0_43], %88 {strides = array<i32>} : memref<8x384xf32, #tpu.memory_space<vmem>>, vector<8x32xf32>,
    %c0_44 = arith.constant 0 : index
    %c128 = arith.constant 128 : index
    %112 = vector.load %arg5[%c0_44, %c128] : memref<8x384xf32, #tpu.memory_space<vmem>>, vector<8x32xf32>
    tpu.vector_store %arg5[%c0_44, %c128], %15 {strides = array<i32>} : memref<8x384xf32, #tpu.memory_space<vmem>>, vector<8x32xf32>,
    %c0_45 = arith.constant 0 : index
    %c256 = arith.constant 256 : index
    %113 = vector.load %arg5[%c0_45, %c256] : memref<8x384xf32, #tpu.memory_space<vmem>>, vector<8x32xf32>
    tpu.vector_store %arg5[%c0_45, %c256], %62 {strides = array<i32>} : memref<8x384xf32, #tpu.memory_space<vmem>>, vector<8x32xf32>,
    return
  }
  func.func @transform_0(%arg0: i32) -> (i32, i32) {
    %c0_i32 = arith.constant 0 : i32
    %c0_i32_0 = arith.constant 0 : i32
    return %arg0, %c0_i32 : i32, i32
  }
  func.func @transform_1(%arg0: i32) -> (i32, i32, i32) {
    %c0_i32 = arith.constant 0 : i32
    %c0_i32_0 = arith.constant 0 : i32
    %c0_i32_1 = arith.constant 0 : i32
    return %arg0, %c0_i32, %c0_i32_0 : i32, i32, i32
  }
  func.func @transform_2(%arg0: i32) -> (i32, i32) {
    %c0_i32 = arith.constant 0 : i32
    %c0_i32_0 = arith.constant 0 : i32
    %c0_i32_1 = arith.constant 0 : i32
    return %c0_i32, %c0_i32_0 : i32, i32
  }
  func.func @transform_3(%arg0: i32) -> (i32, i32) {
    %c0_i32 = arith.constant 0 : i32
    %c0_i32_0 = arith.constant 0 : i32
    %c0_i32_1 = arith.constant 0 : i32
    return %c0_i32, %c0_i32_0 : i32, i32
  }
  func.func @transform_4(%arg0: i32) -> (i32, i32) {
    %c0_i32 = arith.constant 0 : i32
    %c0_i32_0 = arith.constant 0 : i32
    return %arg0, %c0_i32 : i32, i32
  }
  func.func @transform_5(%arg0: i32) -> (i32, i32, i32) {
    %c0_i32 = arith.constant 0 : i32
    %c0_i32_0 = arith.constant 0 : i32
    %c0_i32_1 = arith.constant 0 : i32
    return %arg0, %c0_i32, %c0_i32_0 : i32, i32, i32
  }
}

</mosaic_0001>

<bundles_post_ra>
// kernel: tpu_custom_call.1
= control target key start
LH: loop header
LB: loop body
LE: loop exit
PB: predicated region body
PF: predicated region fallthrough
CT: control target
= control target key end

     0   :  { %11 = vsyncpa [#allocation3], 0  ;;  %s2869_s0 = inlined_call_operand.hbm [shape: f32[8,32], index: 0, kind: input, shape index: {}]   ;;  %s2870_s1 = inlined_call_operand.hbm [shape: f32[8,16,32], index: 1, kind: input, shape index: {}]   ;;  %s2871_s2 = inlined_call_operand.hbm [shape: f32[32,1280], index: 2, kind: input, shape index: {}]   ;;  %s2872_s3 = inlined_call_operand.hbm [shape: f32[8,640], index: 3, kind: input, shape index: {}]   ;;  %s2873_s4 = inlined_call_operand.hbm [shape: f32[8,384], index: 4, kind: output, shape index: {0}]   ;;  %s2874_s5 = inlined_call_operand.hbm [shape: f32[8,16,32], index: 5, kind: output, shape index: {1}]  }
   0x1   :  { %12 = vsyncpa [#allocation6], 0 }
   0x2   :  { %13 = vsyncpa [#allocation9], 0 }
   0x3   :  { %14 = vsyncpa [#allocation4], 0 }
   0x4   :  { %15 = vsyncpa [#allocation12], 0  ;;  %s2168_s18 = smov [#allocation5]  }
   0x5   :  { %s31_s19 = sshll.u32 %s2168_s18, 4  ;;  %s32_s19 = int_to_ptr.vmem [resolvable:$true] %s31_s19 }
   0x6   :  { %s2046_s20 = scalar_lea.vmem %s32_s19, 2048  ;;  %p2051_p1 = scmp.lt.s32.totalorder %s32_s19, %s32_s19 }
   0x7   :  { %p2047_p0 = scmp.ne.s32.totalorder %s32_s19, %s2046_s20  ;;  %p2052_p2 = scmp.lt.s32.totalorder %s2046_s20, %s2046_s20 }
   0x9   :  { %p2053_p3 = por %p2052_p2, %p2051_p1 }
   0xb   :  { %p2054_p4 = pnand %p2053_p3, %p2047_p0 }
   0xd   :  { %2057 = shalt.err (!%p2054_p4)
}
   0xe   :  { %s2169_s21 = smov 128   ;;  %s2170_s22 = smov 8  }
   0xf   :  { %37 = dma.hbm_to_vmem [thread:$0]  %s2870_s1, 2048, %s32_s19, [#allocation6], %s2169_s21, %s2169_s21, %s2170_s22  }
  0x10   :  { %s2171_s25 = smov [#allocation2]   ;;  %s2172_s27 = smov [#allocation7]  }
  0x11   :  { %s22_s26 = sshll.u32 %s2171_s25, 4  ;;  %s43_s28 = sshll.u32 %s2172_s27, 4  ;;  %s23_s26 = int_to_ptr.vmem [resolvable:$true] %s22_s26  ;;  %s44_s28 = int_to_ptr.vmem [resolvable:$true] %s43_s28 }
  0x12   :  { %s2066_s29 = scalar_lea.vmem %s23_s26, 128  ;;  %p2071_p6 = scmp.lt.s32.totalorder %s23_s26, %s23_s26 }
  0x13   :  { %p2067_p5 = scmp.ne.s32.totalorder %s23_s26, %s2066_s29  ;;  %p2072_p7 = scmp.lt.s32.totalorder %s2066_s29, %s2066_s29 }
  0x15   :  { %p2073_p8 = por %p2072_p7, %p2071_p6 }
  0x17   :  { %p2074_p9 = pnand %p2073_p8, %p2067_p5 }
  0x19   :  { %2077 = shalt.err (!%p2074_p9)
}
  0x1a   :  { %25 = dma.hbm_to_vmem [thread:$0]  %s2869_s0, 128, %s23_s26, [#allocation3]  }
  0x1b   :  { %s2086_s7 = scalar_lea.vmem %s44_s28, 5120  ;;  %p2091_p11 = scmp.lt.s32.totalorder %s44_s28, %s44_s28 }
  0x1c   :  { %p2087_p10 = scmp.ne.s32.totalorder %s44_s28, %s2086_s7  ;;  %p2092_p12 = scmp.lt.s32.totalorder %s2086_s7, %s2086_s7 }
  0x1e   :  { %p2093_p13 = por %p2092_p12, %p2091_p11 }
  0x20   :  { %p2094_p0 = pnand %p2093_p13, %p2087_p10 }
  0x22   :  { %2097 = shalt.err (!%p2094_p0)
}
  0x23   :  { %s2173_s1 = smov 1280   ;;  %s2174_s8 = smov 80  }
  0x24   :  { %49 = dma.hbm_to_vmem [thread:$0]  %s2871_s2, 5120, %s44_s28, [#allocation6], %s2173_s1, %s2173_s1, %s2174_s8  }
  0x25   :  { %s2175_s11 = smov [#allocation8]  }
  0x26   :  { %s56_s12 = sshll.u32 %s2175_s11, 4  ;;  %s57_s12 = int_to_ptr.vmem [resolvable:$true] %s56_s12 }
  0x27   :  { %s2106_s13 = scalar_lea.vmem %s57_s12, 640  ;;  %p2111_p2 = scmp.lt.s32.totalorder %s57_s12, %s57_s12 }
  0x28   :  { %p2107_p1 = scmp.ne.s32.totalorder %s57_s12, %s2106_s13  ;;  %p2112_p3 = scmp.lt.s32.totalorder %s2106_s13, %s2106_s13 }
  0x2a   :  { %p2113_p4 = por %p2112_p3, %p2111_p2 }
  0x2c   :  { %p2114_p5 = pnand %p2113_p4, %p2107_p1 }
  0x2e   :  { %2117 = shalt.err (!%p2114_p5)
}
  0x2f   :  { %59 = dma.hbm_to_vmem [thread:$0]  %s2872_s3, 640, %s57_s12, [#allocation9]  }
  0x30   :  { %2158 = dma.done.wait [#allocation3], 128  }
  0x31   :  { %2159 = vsyncadd [#allocation3], 4294967168 }
  0x32   :  { %2160 = dma.done.wait [#allocation6], 7168  }
  0x33   :  { %2161 = vsyncadd [#allocation6], 4294960128 }
  0x34   :  { %2162 = dma.done.wait [#allocation9], 640  }
  0x35   :  { %2163 = vsyncadd [#allocation9], 4294966656  ;;  %v2176_v0 = vmov 0.0   ;;  %v88_v1 = vld [vmem:[#allocation7 + $0xf8] sm:$0xff]  ;;  %v87_v2 = vld [vmem:[#allocation7 + $0xf0] sm:$0xff]  ;;  %vm135_vm0 = vcmask 261120  }
  0x36   :  { %262 = vmatprep.mubr.f32.mxu0 %v2176_v0  ;;  %1825 = vst [vmem:[#allocation10] sm:$0xff] %v2176_v0  ;;  %1826 = vst [vmem:[#allocation10 + $0x8] sm:$0xff] %v2176_v0  ;;  %333 = vmatprep.mubr.f32.mxu1 %v2176_v0  ;;  %v83_v3 = vld [vmem:[#allocation7 + $0xa8] sm:$0xff]  ;;  %v82_v4 = vld [vmem:[#allocation7 + $0xa0] sm:$0xff]  ;;  %vm2177_vm1 = vmmov 0   ;;  %vm660_vm2 = vcmask 253952  }
  0x37   :  { %1827 = vst [vmem:[#allocation10 + $0x10] sm:$0xff] %v2176_v0  ;;  %222 = vmatprep.subr.mxu0 %v88_v1  ;;  %v78_v5 = vld [vmem:[#allocation7 + $0x58] sm:$0xff]  ;;  %v77_v6 = vld [vmem:[#allocation7 + $0x50] sm:$0xff]  ;;  %v73_v7 = vld [vmem:[#allocation7 + $0x8] sm:$0xff]  ;;  %vm887_vm4 = vcmask 7168   ;;  %vm1296_vm5 = vcmask 1041409  }
  0x38   :  { %223 = vmatpush1.msra.mxu0 %v87_v2  ;;  %v72_v8 = vld [vmem:[#allocation7] sm:$0xff]  ;;  %v152_v9 = vld [vmem:[#allocation2] sm:$0xff]  ;;  %v120_v10 = vld [vmem:[#allocation5 + $0x8] sm:$0xff]  ;;  %vm1298_vm6 = vcmask 1042434   ;;  %vm1300_vm7 = vcmask 1043459   ;;  %vm1302_vm8 = vcmask 1044484  }
  0x39   :  { %224 = vmatprep.subr.mxu0 %v83_v3  ;;  %v119_v11 = vld [vmem:[#allocation5] sm:$0xff]  ;;  %v91_v12 = vld [vmem:[#allocation7 + $0x110] sm:$0xff]  ;;  %137 = vst.msk [vmem:[#allocation11 + $0x8] sm:$0xff] %vm135_vm0, %v120_v10  ;;  %v122_v13 = vld [vmem:[#allocation5 + $0x18] sm:$0xff]  ;;  %vm1304_vm9 = vcmask 1045509   ;;  %vm1306_vm10 = vcmask 1046534  }
  0x3a   :  { %225 = vmatpush1.msra.mxu0 %v82_v4  ;;  %136 = vst.msk [vmem:[#allocation11] sm:$0xff] %vm135_vm0, %v119_v11  ;;  %v121_v14 = vld [vmem:[#allocation5 + $0x10] sm:$0xff]  ;;  %v123_v15 = vld [vmem:[#allocation5 + $0x20] sm:$0xff]  ;;  %139 = vst.msk [vmem:[#allocation11 + $0x18] sm:$0xff] %vm135_vm0, %v122_v13  ;;  %vm1308_vm11 = vcmask 1047559   ;;  %s2180_s2 = smov [#allocation10]  }
  0x3b   :  { %226 = vmatprep.subr.mxu0 %v78_v5  ;;  %138 = vst.msk [vmem:[#allocation11 + $0x10] sm:$0xff] %vm135_vm0, %v121_v14  ;;  %140 = vst.msk [vmem:[#allocation11 + $0x20] sm:$0xff] %vm135_vm0, %v123_v15  ;;  %v124_v16 = vld [vmem:[#allocation5 + $0x28] sm:$0xff]  ;;  %v126_v17 = vld [vmem:[#allocation5 + $0x38] sm:$0xff]  ;;  %v170_v14 = vlaneseq  ;;  %s1838_s3 = sshll.u32 %s2180_s2, 4  ;;  %s1839_s3 = int_to_ptr.vmem [resolvable:$true] %s1838_s3 }
  0x3c   :  { %227 = vmatpush1.msra.mxu0 %v77_v6  ;;  %v125_v18 = vld [vmem:[#allocation5 + $0x30] sm:$0xff]  ;;  %141 = vst.msk [vmem:[#allocation11 + $0x28] sm:$0xff] %vm135_vm0, %v124_v16  ;;  %143 = vst.msk [vmem:[#allocation11 + $0x38] sm:$0xff] %vm135_vm0, %v126_v17  ;;  %v127_v19 = vld [vmem:[#allocation5 + $0x40] sm:$0xff]  ;;  %s2118_s15 = scalar_lea.vmem %s1839_s3, 384  ;;  %p2123_p7 = scmp.lt.s32.totalorder %s1839_s3, %s1839_s3 }
  0x3d   :  { %228 = vmatprep.subr.mxu0 %v73_v7  ;;  %142 = vst.msk [vmem:[#allocation11 + $0x30] sm:$0xff] %vm135_vm0, %v125_v18  ;;  %v128_v20 = vld [vmem:[#allocation5 + $0x48] sm:$0xff]  ;;  %v130_v21 = vld [vmem:[#allocation5 + $0x58] sm:$0xff]  ;;  %144 = vst.msk [vmem:[#allocation11 + $0x40] sm:$0xff] %vm135_vm0, %v127_v19  ;;  %v2339_v15 = vshrl.u32 %v170_v14, 7  ;;  %p2119_p6 = scmp.ne.s32.totalorder %s1839_s3, %s2118_s15  ;;  %p2124_p8 = scmp.lt.s32.totalorder %s2118_s15, %s2118_s15 }
  0x3e   :  { %229 = vmatpush1.msra.mxu0 %v72_v8  ;;  %145 = vst.msk [vmem:[#allocation11 + $0x48] sm:$0xff] %vm135_vm0, %v128_v20  ;;  %147 = vst.msk [vmem:[#allocation11 + $0x58] sm:$0xff] %vm135_vm0, %v130_v21  ;;  %v129_v22 = vld [vmem:[#allocation5 + $0x50] sm:$0xff]  ;;  %v86_v23 = vld [vmem:[#allocation7 + $0xc0] sm:$0xff]  ;;  %v2178_v18 = vmov 1966171168  }
  0x3f   :  { %1865 = vmatmul.mubr.msk.f32.vlgmr.msra.gmra.mxu0 %vm135_vm0, %v152_v9  ;;  %1884 = vmatprep.subr.mxu0 %v2176_v0  ;;  %146 = vst.msk [vmem:[#allocation11 + $0x50] sm:$0xff] %vm135_vm0, %v129_v22  ;;  %v81_v24 = vld [vmem:[#allocation7 + $0x70] sm:$0xff]  ;;  %v76_v27 = vld [vmem:[#allocation7 + $0x20] sm:$0xff]  ;;  %v132_v63 = vld [vmem:[#allocation5 + $0x68] sm:$0xff]  ;;  %v429_v19 = vunpack.c.l.s4 %v2178_v18  ;;  %v2344_v21 = vsub.s32 0, %v2339_v15  ;;  %p2125_p9 = por %p2124_p8, %p2123_p7 }
  0x40   :  { %1885 = vmatpush3.msra.mxu0 %v91_v12  ;;  %1892 = vmatprep.mubr.msk.f32.mxu0 %vm2177_vm1, %v2176_v0  ;;  %v2249_v25 = vld [vmem:[#allocation11 + $0x8] sm:$0xff]  ;;  %v131_v62 = vld [vmem:[#allocation5 + $0x60] sm:$0xff]  ;;  %149 = vst.msk [vmem:[#allocation11 + $0x68] sm:$0xff] %vm135_vm0, %v132_v63  ;;  %v134_v1 = vld [vmem:[#allocation5 + $0x78] sm:$0xff] }
  0x41   :  { %1886 = vmatprep.subr.mxu0 %v2176_v0  ;;  %v2251_v26 = vld [vmem:[#allocation11] sm:$0xff]  ;;  %v589_v28 = vmul.f32 %v2249_v25, %v2249_v25  ;;  %v2258_v30 = vld [vmem:[#allocation11 + $0x18] sm:$0xff]  ;;  %148 = vst.msk [vmem:[#allocation11 + $0x60] sm:$0xff] %vm135_vm0, %v131_v62  ;;  %151 = vst.msk [vmem:[#allocation11 + $0x78] sm:$0xff] %vm135_vm0, %v134_v1  ;;  %v430_v22 = vunpack.c.0.s8 %v429_v19  ;;  %p2126_p10 = pnand %p2125_p9, %p2119_p6 }
  0x42   :  { %1887 = vmatpush3.msra.mxu0 %v86_v23  ;;  %v588_v29 = vmul.f32 %v2251_v26, %v2251_v26  ;;  %v2260_v31 = vld [vmem:[#allocation11 + $0x10] sm:$0xff]  ;;  %v591_v32 = vmul.f32 %v2258_v30, %v2258_v30  ;;  %v2266_v34 = vld [vmem:[#allocation11 + $0x20] sm:$0xff] }
  0x43   :  { %1888 = vmatprep.subr.mxu0 %v2176_v0  ;;  %v590_v33 = vmul.f32 %v2260_v31, %v2260_v31  ;;  %v607_v35 = vsel %vm135_vm0, %v589_v28, 0.0  ;;  %v2271_v37 = vld [vmem:[#allocation11 + $0x28] sm:$0xff]  ;;  %v592_v39 = vmul.f32 %v2266_v34, %v2266_v34  ;;  %v2280_v42 = vld [vmem:[#allocation11 + $0x38] sm:$0xff]  ;;  %v113_v17 = vld [vmem:[#allocation8] ss:$8 sm:$0x10] }
  0x44   :  { %1889 = vmatpush3.msra.mxu0 %v81_v24  ;;  %v604_v36 = vsel %vm135_vm0, %v588_v29, 0.0  ;;  %608 = vadd.xlane.f32.xlu0 %v607_v35  ;;  %v613_v38 = vsel %vm135_vm0, %v591_v32, 0.0  ;;  %v593_v41 = vmul.f32 %v2271_v37, %v2271_v37  ;;  %v2285_v43 = vld [vmem:[#allocation11 + $0x30] sm:$0xff]  ;;  %v595_v45 = vmul.f32 %v2280_v42, %v2280_v42  ;;  %v2293_v48 = vld [vmem:[#allocation11 + $0x40] sm:$0xff] }
  0x45   :  { %1890 = vmatprep.subr.mxu0 %v2176_v0  ;;  %605 = vadd.xlane.f32.xlu1 %v604_v36  ;;  %v610_v40 = vsel %vm135_vm0, %v590_v33, 0.0  ;;  %v616_v44 = vsel %vm135_vm0, %v592_v39, 0.0  ;;  %v594_v47 = vmul.f32 %v2285_v43, %v2285_v43  ;;  %v2295_v49 = vld [vmem:[#allocation11 + $0x48] sm:$0xff]  ;;  %v596_v51 = vmul.f32 %v2293_v48, %v2293_v48  ;;  %v2303_v54 = vld [vmem:[#allocation11 + $0x58] sm:$0xff] }
  0x46   :  { %1891 = vmatpush3.msra.mxu0 %v76_v27  ;;  %v619_v46 = vsel %vm135_vm0, %v593_v41, 0.0  ;;  %v625_v50 = vsel %vm135_vm0, %v595_v45, 0.0  ;;  %v597_v53 = vmul.f32 %v2295_v49, %v2295_v49  ;;  %v2305_v55 = vld [vmem:[#allocation11 + $0x50] sm:$0xff]  ;;  %v599_v57 = vmul.f32 %v2303_v54, %v2303_v54 }
  0x47   :  { %1893 = vmatmul.mubr.msk.f32.vlgmr.msra.gmra.mxu0 %vm135_vm0, %v152_v9  ;;  %1895 = vmatprep.subr.mxu0 %v2176_v0  ;;  %v622_v52 = vsel %vm135_vm0, %v594_v47, 0.0  ;;  %v628_v56 = vsel %vm135_vm0, %v596_v51, 0.0  ;;  %v598_v59 = vmul.f32 %v2305_v55, %v2305_v55  ;;  %v2323_v4 = vld [vmem:[#allocation11 + $0x68] sm:$0xff]  ;;  %v2349_v24 = vsub.s32 %v430_v22, %v2339_v15 }
  0x48   :  { %1903 = vmatprep.mubr.msk.f32.mxu0 %vm2177_vm1, %v2176_v0  ;;  %614 = vadd.xlane.f32.xlu0 %v613_v38  ;;  %v631_v58 = vsel %vm135_vm0, %v597_v53, 0.0  ;;  %v637_v60 = vsel %vm135_vm0, %v599_v57, 0.0  ;;  %v133_v0 = vld [vmem:[#allocation5 + $0x70] sm:$0xff]  ;;  %v2319_v2 = vld [vmem:[#allocation11 + $0x60] sm:$0xff]  ;;  %v601_v6 = vmul.f32 %v2323_v4, %v2323_v4  ;;  %v2333_v10 = vld [vmem:[#allocation11 + $0x78] sm:$0xff] }
  0x49   :  { %611 = vadd.xlane.f32.xlu1 %v610_v40  ;;  %v634_v61 = vsel %vm135_vm0, %v598_v59, 0.0  ;;  %150 = vst.msk [vmem:[#allocation11 + $0x70] sm:$0xff] %vm135_vm0, %v133_v0  ;;  %v600_v3 = vmul.f32 %v2319_v2, %v2319_v2  ;;  %v603_v12 = vmul.f32 %v2333_v10, %v2333_v10  ;;  %v112_v16 = vld [vmem:[#allocation8] ss:$8 sm:$0xf] }
  0x4a   :  { %v643_v8 = vsel %vm135_vm0, %v601_v6, 0.0  ;;  %v2341_v20 = vor.u32 %v113_v17, %v112_v16 }
  0x4b   :  { %v640_v5 = vsel %vm135_vm0, %v600_v3, 0.0  ;;  %v649_v13 = vsel %vm135_vm0, %v603_v12, 0.0 }
  0x4c   :  { %617 = vadd.xlane.f32.xlu0 %v616_v44  ;;  %v173_v23 = vrot.slane %v2341_v20, %v2344_v21 }
  0x4d   :  { %620 = vadd.xlane.f32.xlu1 %v619_v46 }
  0x50   :  { %626 = vadd.xlane.f32.xlu0 %v625_v50  ;;  %v2328_v7 = vld [vmem:[#allocation11 + $0x70] sm:$0xff] }
  0x51   :  { %623 = vadd.xlane.f32.xlu1 %v622_v52  ;;  %v602_v9 = vmul.f32 %v2328_v7, %v2328_v7 }
  0x53   :  { %v646_v11 = vsel %vm135_vm0, %v602_v9, 0.0 }
  0x54   :  { %629 = vadd.xlane.f32.xlu0 %v628_v56 }
  0x55   :  { %632 = vadd.xlane.f32.xlu1 %v631_v58 }
  0x58   :  { %638 = vadd.xlane.f32.xlu0 %v637_v60 }
  0x59   :  { %635 = vadd.xlane.f32.xlu1 %v634_v61 }
  0x5c   :  { %641 = vadd.xlane.f32.xlu0 %v640_v5 }
  0x5d   :  { %644 = vadd.xlane.f32.xlu1 %v643_v8 }
  0x60   :  { %647 = vadd.xlane.f32.xlu0 %v646_v11 }
  0x61   :  { %650 = vadd.xlane.f32.xlu1 %v649_v13 }
  0xff   :  { %v264_v27 = vpop.f32.mrf.mxu0 }
 0x100   :  { %v265_v28 = vadd.f32 %v264_v27, %v173_v23 }
 0x101   :  { %v2355_v38 = vpop.f32.mrf.mxu0 }
 0x102   :  { %v427_v29 = vcombine.high %v265_v28, %v265_v28  ;;  %v434_v32 = vrot.slane %v265_v28, %v2349_v24  ;;  %1829 = vst.msk [vmem:[#allocation10 + $0x8] sm:$0xff] %vm135_vm0, %v265_v28 }
 0x104   :  { %v441_v33 = vrot.slane %v427_v29, %v2349_v24  ;;  %v442_v35 = vcombine.high %v434_v32, %v434_v32  ;;  %v450_v36 = vrot.slane %v434_v32, %v2349_v24 }
 0x106   :  { %v652_v39 = vmul.f32 %v450_v36, %v450_v36  ;;  %v472_v40 = vcombine.high %v450_v36, %v450_v36  ;;  %v464_v41 = vrot.slane %v442_v35, %v2349_v24  ;;  %v487_v44 = vrot.slane %v450_v36, %v2344_v21 }
 0x107   :  { %v2359_v45 = vpop.f32.mrf.mxu0  ;;  %v457_v51 = vrot.slane %v441_v33, %v2349_v24  ;;  %v443_v58 = vcombine.high %v441_v33, %v441_v33 }
 0x108   :  { %v661_v46 = vsel %vm660_vm2, %v652_v39, 0.0  ;;  %v654_v47 = vmul.f32 %v472_v40, %v472_v40  ;;  %v653_v50 = vmul.f32 %v464_v41, %v464_v41  ;;  %v525_v56 = vmul.f32 %v487_v44, %v2249_v25 }
 0x109   :  { %662 = vadd.xlane.f32.xlu0 %v661_v46  ;;  %v1894_v52 = vpop.f32.mrf.mxu0  ;;  %v474_v57 = vcombine.high %v464_v41, %v464_v41  ;;  %v656_v60 = vmul.f32 %v457_v51, %v457_v51  ;;  %v471_v63 = vrot.slane %v443_v58, %v2349_v24  ;;  %v524_v1 = vmul.f32 %v487_v44, %v2251_v26 }
 0x10a   :  { %v667_v53 = vsel %vm660_vm2, %v654_v47, 0.0  ;;  %v664_v59 = vsel %vm660_vm2, %v653_v50, 0.0  ;;  %v543_v61 = vsel %vm135_vm0, %v525_v56, 0.0  ;;  %v473_v3 = vcombine.high %v457_v51, %v457_v51 }
 0x10b   :  { %668 = vadd.xlane.f32.xlu1 %v667_v53  ;;  %v655_v62 = vmul.f32 %v474_v57, %v474_v57  ;;  %v673_v0 = vsel %vm660_vm2, %v656_v60, 0.0  ;;  %v657_v5 = vmul.f32 %v471_v63, %v471_v63  ;;  %v491_v6 = vrot.slane %v464_v41, %v2344_v21  ;;  %v606_v60 = vpop.xlane.xlu1 %605 }
 0x10c   :  { %v540_v8 = vsel %vm135_vm0, %v524_v1, 0.0  ;;  %v658_v9 = vmul.f32 %v473_v3, %v473_v3  ;;  %v495_v13 = vrot.slane %v472_v40, %v2344_v21  ;;  %v475_v18 = vcombine.high %v471_v63, %v471_v63 }
 0x10d   :  { %665 = vadd.xlane.f32.xlu0 %v664_v59  ;;  %v670_v25 = vsel %vm660_vm2, %v655_v62, 0.0  ;;  %v676_v11 = vsel %vm660_vm2, %v657_v5, 0.0  ;;  %v527_v12 = vmul.f32 %v491_v6, %v2258_v30  ;;  %v526_v14 = vmul.f32 %v491_v6, %v2260_v31  ;;  %v609_v59 = vpop.xlane.xlu0 %608 }
 0x10e   :  { %v679_v26 = vsel %vm660_vm2, %v658_v9, 0.0  ;;  %v529_v17 = vmul.f32 %v495_v13, %v2271_v37  ;;  %v528_v22 = vmul.f32 %v495_v13, %v2266_v34  ;;  %v503_v30 = vrot.slane %v457_v51, %v2344_v21 }
 0x10f   :  { %544 = vadd.xlane.f32.xlu1 %v543_v61  ;;  %v549_v16 = vsel %vm135_vm0, %v527_v12, 0.0  ;;  %v546_v19 = vsel %vm135_vm0, %v526_v14, 0.0  ;;  %v659_v27 = vmul.f32 %v475_v18, %v475_v18  ;;  %v499_v29 = vrot.slane %v474_v57, %v2344_v21 }
 0x110   :  { %v555_v23 = vsel %vm135_vm0, %v529_v17, 0.0  ;;  %v552_v31 = vsel %vm135_vm0, %v528_v22, 0.0  ;;  %v532_v28 = vmul.f32 %v503_v30, %v2293_v48  ;;  %v533_v32 = vmul.f32 %v503_v30, %v2295_v49 }
 0x111   :  { %674 = vadd.xlane.f32.xlu0 %v673_v0  ;;  %v682_v37 = vsel %vm660_vm2, %v659_v27, 0.0  ;;  %v530_v33 = vmul.f32 %v499_v29, %v2285_v43  ;;  %v507_v35 = vrot.slane %v471_v63, %v2344_v21  ;;  %v531_v39 = vmul.f32 %v499_v29, %v2280_v42  ;;  %v615_v62 = vpop.xlane.xlu0 %614 }
 0x112   :  { %v564_v34 = vsel %vm135_vm0, %v532_v28, 0.0  ;;  %v567_v36 = vsel %vm135_vm0, %v533_v32, 0.0  ;;  %v511_v41 = vrot.slane %v473_v3, %v2344_v21  ;;  %v515_v47 = vrot.slane %v475_v18, %v2344_v21 }
 0x113   :  { %671 = vadd.xlane.f32.xlu1 %v670_v25  ;;  %v558_v48 = vsel %vm135_vm0, %v530_v33, 0.0  ;;  %v534_v40 = vmul.f32 %v507_v35, %v2305_v55  ;;  %v561_v49 = vsel %vm135_vm0, %v531_v39, 0.0  ;;  %v535_v44 = vmul.f32 %v507_v35, %v2303_v54 }
 0x114   :  { %v536_v46 = vmul.f32 %v511_v41, %v2319_v2  ;;  %v537_v50 = vmul.f32 %v511_v41, %v2323_v4  ;;  %v538_v51 = vmul.f32 %v515_v47, %v2328_v7  ;;  %v539_v52 = vmul.f32 %v515_v47, %v2333_v10  ;;  %v612_v10 = vpop.xlane.xlu1 %611 }
 0x115   :  { %541 = vadd.xlane.f32.xlu0 %v540_v8  ;;  %v570_v43 = vsel %vm135_vm0, %v534_v40, 0.0  ;;  %v573_v42 = vsel %vm135_vm0, %v535_v44, 0.0  ;;  %v188_v56 = vsub.s32 4, %v2339_v15  ;;  %v618_v63 = vpop.xlane.xlu0 %617  ;;  %v2179_v1 = vmov 0  }
 0x116   :  { %v576_v55 = vsel %vm135_vm0, %v536_v46, 0.0  ;;  %v579_v54 = vsel %vm135_vm0, %v537_v50, 0.0  ;;  %v582_v2 = vsel %vm135_vm0, %v538_v51, 0.0  ;;  %v585_v53 = vsel %vm135_vm0, %v539_v52, 0.0  ;;  %1921 = vset.pattern.permute.xlu1 %v2179_v1  ;;  %1920 = vset.pattern.permute.xlu0 %v2179_v1 }
 0x117   :  { %677 = vadd.xlane.f32.xlu1 %v676_v11  ;;  %v189_v4 = vrot.slane %v2341_v20, %v188_v56 }
 0x118   :  { %v621_v0 = vpop.xlane.xlu1 %620 }
 0x119   :  { %680 = vadd.xlane.f32.xlu0 %v679_v26  ;;  %v407_v57 = vadd.f32 %v2359_v45, %v189_v4  ;;  %v2413_v3 = vpop.xlane.xlu0 %626 }
 0x11b   :  { %550 = vadd.xlane.f32.xlu1 %v549_v16  ;;  %v412_v58 = vand.u32 2147483647, %v407_v57  ;;  %v410_v18 = vmax.f32 %v407_v57, 0.0 }
 0x11c   :  { %v624_v5 = vpop.xlane.xlu1 %623 }
 0x11d   :  { %547 = vadd.xlane.f32.xlu0 %v546_v19  ;;  %v413_v7 = vsub.f32 0.0, %v412_v58  ;;  %v630_v8 = vpop.xlane.xlu0 %629  ;;  %v411_v27 = vadd.f32 1.0, %v410_v18 }
 0x11f   :  { %556 = vadd.xlane.f32.xlu1 %v555_v23  ;;  %v414_v61 = vmul.f32 1.442695, %v413_v7 }
 0x120   :  { %v633_v45 = vpop.xlane.xlu1 %632 }
 0x121   :  { %553 = vadd.xlane.f32.xlu0 %v552_v31  ;;  %1922 = vpow2.f32 %v414_v61  ;;  %v2415_v9 = vpop.xlane.xlu0 %638 }
 0x123   :  { %683 = vadd.xlane.f32.xlu1 %v682_v37 }
 0x124   :  { %v2417_v11 = vpop.xlane.xlu1 %635 }
 0x125   :  { %565 = vadd.xlane.f32.xlu0 %v564_v34  ;;  %v2419_v13 = vpop.xlane.xlu0 %641 }
 0x127   :  { %568 = vadd.xlane.f32.xlu1 %v567_v36 }
 0x128   :  { %v2421_v26 = vpop.xlane.xlu1 %644 }
 0x129   :  { %559 = vadd.xlane.f32.xlu0 %v558_v48  ;;  %v2423_v19 = vpop.xlane.xlu0 %647 }
 0x12b   :  { %562 = vadd.xlane.f32.xlu1 %v561_v49 }
 0x12c   :  { %v2425_v23 = vpop.xlane.xlu1 %650 }
 0x12d   :  { %571 = vadd.xlane.f32.xlu0 %v570_v43 }
 0x12e   :  { %v1923_v25 = vpop.eup %1922 }
 0x12f   :  { %574 = vadd.xlane.f32.xlu1 %v573_v42  ;;  %v416_v6 = vadd.f32 1.0, %v1923_v25  ;;  %v419_v12 = vmul.f32 -0.5, %v1923_v25  ;;  %v422_v17 = vand.u32 2147483647, %v1923_v25 }
 0x131   :  { %577 = vadd.xlane.f32.xlu0 %v576_v55  ;;  %1924 = vlog2.f32 %v416_v6  ;;  %v420_v14 = vadd.f32 1.0, %v419_v12  ;;  %vm423_vm3 = vcmp.lt.f32.partialorder %v422_v17, 0.0004427343 }
 0x133   :  { %580 = vadd.xlane.f32.xlu1 %v579_v54  ;;  %v421_v30 = vmul.f32 %v1923_v25, %v420_v14 }
 0x135   :  { %583 = vadd.xlane.f32.xlu0 %v582_v2 }
 0x137   :  { %586 = vadd.xlane.f32.xlu1 %v585_v53 }
 0x13e   :  { %v1925_v16 = vpop.eup %1924 }
 0x13f   :  { %v418_v22 = vmul.f32 0.6931472, %v1925_v16 }
 0x141   :  { %v424_v31 = vsel %vm423_vm3, %v421_v30, %v418_v22 }
 0x142   :  { %v425_v37 = vadd.f32 %v424_v31, %v411_v27 }
 0x144   :  { %v789_v49 = vrot.slane %v425_v37, %v2349_v24  ;;  %v782_v42 = vcombine.high %v425_v37, %v425_v37 }
 0x146   :  { %v797_v56 = vcombine.high %v789_v49, %v789_v49 }
 0x148   :  { %v819_v6 = vrot.slane %v797_v56, %v2349_v24 }
 0x14a   :  { %v829_v30 = vcombine.high %v819_v6, %v819_v6 }
 0x192   :  { %v663_v28 = vpop.xlane.xlu0 %662 }
 0x193   :  { %v688_v29 = vrot.slane %v663_v28, %v2344_v21 }
 0x194   :  { %v669_v32 = vpop.xlane.xlu1 %668 }
 0x195   :  { %v717_v34 = vmul.f32 %v688_v29, %v606_v60  ;;  %v718_v33 = vmul.f32 %v688_v29, %v609_v59  ;;  %v696_v35 = vrot.slane %v669_v32, %v2344_v21  ;;  %v796_v59 = vrot.slane %v782_v42, %v2349_v24 }
 0x196   :  { %v666_v36 = vpop.xlane.xlu0 %665 }
 0x197   :  { %v733_v39 = vmax.f32 %v717_v34, 1e-16  ;;  %v734_v48 = vmax.f32 %v718_v33, 1e-16  ;;  %v721_v40 = vmul.f32 %v696_v35, %v618_v63  ;;  %v722_v41 = vmul.f32 %v696_v35, %v621_v0 }
 0x198   :  { %v692_v44 = vrot.slane %v666_v36, %v2344_v21  ;;  %v545_v43 = vpop.xlane.xlu1 %544  ;;  %v838_v33 = vrot.slane %v819_v6, %v2344_v21 }
 0x199   :  { %1926 = vrsqrt.f32 %v733_v39  ;;  %v737_v46 = vmax.f32 %v721_v40, 1e-16  ;;  %v738_v47 = vmax.f32 %v722_v41, 1e-16  ;;  %v2453_v41 = vrot.slane %v829_v30, %v2344_v21 }
 0x19a   :  { %1928 = vrsqrt.f32 %v734_v48  ;;  %v719_v50 = vmul.f32 %v692_v44, %v612_v10  ;;  %v720_v55 = vmul.f32 %v692_v44, %v615_v62  ;;  %v675_v51 = vpop.xlane.xlu0 %674  ;;  %v805_v10 = vrot.slane %v789_v49, %v2349_v24 }
 0x19b   :  { %v704_v54 = vrot.slane %v675_v51, %v2344_v21  ;;  %1930 = vrsqrt.f32 %v738_v47 }
 0x19c   :  { %v735_v52 = vmax.f32 %v719_v50, 1e-16  ;;  %v736_v2 = vmax.f32 %v720_v55, 1e-16  ;;  %v672_v53 = vpop.xlane.xlu1 %671  ;;  %1932 = vrsqrt.f32 %v737_v46  ;;  %v827_v18 = vcombine.high %v805_v10, %v805_v10 }
 0x19d   :  { %v725_v4 = vmul.f32 %v704_v54, %v630_v8  ;;  %v726_v57 = vmul.f32 %v704_v54, %v633_v45  ;;  %v700_v58 = vrot.slane %v672_v53, %v2344_v21  ;;  %v798_v45 = vcombine.high %v796_v59, %v796_v59 }
 0x19e   :  { %1934 = vrsqrt.f32 %v735_v52  ;;  %v542_v7 = vpop.xlane.xlu0 %541  ;;  %v834_v31 = vrot.slane %v805_v10, %v2344_v21  ;;  %v842_v35 = vrot.slane %v827_v18, %v2344_v21 }
 0x19f   :  { %1936 = vrsqrt.f32 %v736_v2  ;;  %v741_v60 = vmax.f32 %v725_v4, 1e-16  ;;  %v742_v61 = vmax.f32 %v726_v57, 1e-16  ;;  %v723_v62 = vmul.f32 %v700_v58, %v624_v5 }
 0x1a0   :  { %v724_v63 = vmul.f32 %v700_v58, %v2413_v3  ;;  %v678_v0 = vpop.xlane.xlu1 %677  ;;  %v812_v3 = vrot.slane %v796_v59, %v2349_v24  ;;  %v2445_v32 = vrot.slane %v798_v45, %v2349_v24 }
 0x1a1   :  { %1938 = vrsqrt.f32 %v741_v60  ;;  %v739_v1 = vmax.f32 %v723_v62, 1e-16  ;;  %v708_v25 = vrot.slane %v678_v0, %v2344_v21 }
 0x1a2   :  { %1940 = vrsqrt.f32 %v742_v61  ;;  %v681_v8 = vpop.xlane.xlu0 %680  ;;  %v740_v12 = vmax.f32 %v724_v63, 1e-16  ;;  %v828_v39 = vcombine.high %v812_v3, %v812_v3  ;;  %v2462_v54 = vrot.slane %v2445_v32, %v2344_v21 }
 0x1a3   :  { %v727_v14 = vmul.f32 %v708_v25, %v2417_v11  ;;  %v728_v16 = vmul.f32 %v708_v25, %v2415_v9  ;;  %v712_v5 = vrot.slane %v681_v8, %v2344_v21  ;;  %1942 = vrsqrt.f32 %v739_v1 }
 0x1a4   :  { %v551_v17 = vpop.xlane.xlu1 %550  ;;  %1944 = vrsqrt.f32 %v740_v12  ;;  %v2469_v4 = vrot.slane %v828_v39, %v2344_v21 }
 0x1a5   :  { %v743_v22 = vmax.f32 %v727_v14, 1e-16  ;;  %v729_v28 = vmul.f32 %v712_v5, %v2419_v13  ;;  %v744_v9 = vmax.f32 %v728_v16, 1e-16  ;;  %v850_v13 = vrot.slane %v812_v3, %v2344_v21 }
 0x1a6   :  { %v1927_v27 = vpop.eup %1926  ;;  %v548_v29 = vpop.xlane.xlu0 %547 }
 0x1a7   :  { %v1929_v37 = vpop.eup %1928  ;;  %v765_v11 = vmul.f32 %v1927_v27, %v542_v7  ;;  %1946 = vrsqrt.f32 %v743_v22  ;;  %v745_v46 = vmax.f32 %v729_v28, 1e-16 }
 0x1a8   :  { %v766_v34 = vmul.f32 %v1929_v37, %v545_v43  ;;  %v557_v36 = vpop.xlane.xlu1 %556  ;;  %v1931_v48 = vpop.eup %1930  ;;  %v730_v43 = vmul.f32 %v712_v5, %v2421_v26  ;;  %1948 = vrsqrt.f32 %v744_v9 }
 0x1a9   :  { %v2449_v40 = vmul.f32 %v834_v31, %v765_v11  ;;  %v1933_v49 = vpop.eup %1932  ;;  %v770_v47 = vmul.f32 %v1931_v48, %v557_v36  ;;  %1950 = vrsqrt.f32 %v745_v46 }
 0x1aa   :  { %v2455_v44 = vmul.f32 %v834_v31, %v766_v34  ;;  %v554_v42 = vpop.xlane.xlu0 %553  ;;  %v746_v61 = vmax.f32 %v730_v43, 1e-16 }
 0x1ab   :  { %v1935_v50 = vpop.eup %1934  ;;  %v888_v55 = vsel %vm887_vm4, %v2449_v40, -inf  ;;  %v769_v51 = vmul.f32 %v1933_v49, %v554_v42  ;;  %v2466_v56 = vmul.f32 %v842_v35, %v770_v47 }
 0x1ac   :  { %v1937_v52 = vpop.eup %1936  ;;  %v889_v2 = vsel %vm887_vm4, %v2455_v44, -inf  ;;  %v767_v53 = vmul.f32 %v1935_v50, %v548_v29  ;;  %v684_v26 = vpop.xlane.xlu1 %683 }
 0x1ad   :  { %v890_v57 = vmax.f32 %v888_v55, %v889_v2  ;;  %v768_v58 = vmul.f32 %v1937_v52, %v551_v17  ;;  %v2471_v7 = vmul.f32 %v842_v35, %v769_v51  ;;  %v716_v59 = vrot.slane %v684_v26, %v2344_v21 }
 0x1ae   :  { %v1939_v60 = vpop.eup %1938  ;;  %v2474_v62 = vmul.f32 %v838_v33, %v767_v53  ;;  %v907_v10 = vsel %vm887_vm4, %v2466_v56, -inf  ;;  %v566_v63 = vpop.xlane.xlu0 %565  ;;  %v830_v2 = vcombine.high %v2445_v32, %v2445_v32 }
 0x1af   :  { %v1941_v0 = vpop.eup %1940  ;;  %v891_v1 = vrot.slane %v890_v57, 4  ;;  %v2478_v25 = vmul.f32 %v838_v33, %v768_v58  ;;  %v906_v6 = vsel %vm887_vm4, %v2471_v7, -inf  ;;  %v731_v8 = vmul.f32 %v716_v59, %v2423_v19 }
 0x1b0   :  { %v897_v45 = vsel %vm887_vm4, %v2474_v62, -inf  ;;  %v908_v12 = vmax.f32 %v906_v6, %v907_v10  ;;  %v732_v14 = vmul.f32 %v716_v59, %v2425_v23  ;;  %v773_v16 = vmul.f32 %v1939_v60, %v566_v63  ;;  %v569_v5 = vpop.xlane.xlu1 %568  ;;  %v1943_v30 = vpop.eup %1942 }
 0x1b1   :  { %v892_v17 = vmax.f32 %v890_v57, %v891_v1  ;;  %v898_v18 = vsel %vm887_vm4, %v2478_v25, -inf  ;;  %v747_v3 = vmax.f32 %v731_v8, 1e-16  ;;  %v774_v22 = vmul.f32 %v1941_v0, %v569_v5  ;;  %v1945_v9 = vpop.eup %1944 }
 0x1b2   :  { %v899_v27 = vmax.f32 %v897_v45, %v898_v18  ;;  %v909_v31 = vrot.slane %v908_v12, 4  ;;  %v748_v28 = vmax.f32 %v732_v14, 1e-16  ;;  %v2488_v29 = vmul.f32 %v850_v13, %v773_v16  ;;  %v560_v19 = vpop.xlane.xlu0 %559 }
 0x1b3   :  { %v893_v37 = vrot.slane %v892_v17, 2  ;;  %1952 = vrsqrt.f32 %v747_v3  ;;  %v2490_v11 = vmul.f32 %v850_v13, %v774_v22  ;;  %v771_v23 = vmul.f32 %v1943_v30, %v560_v19 }
 0x1b4   :  { %v900_v34 = vrot.slane %v899_v27, 4  ;;  %v910_v33 = vmax.f32 %v908_v12, %v909_v31  ;;  %1954 = vrsqrt.f32 %v748_v28  ;;  %v924_v35 = vsel %vm887_vm4, %v2488_v29, -inf  ;;  %v563_v36 = vpop.xlane.xlu1 %562  ;;  %v1947_v46 = vpop.eup %1946 }
 0x1b5   :  { %v894_v39 = vmax.f32 %v892_v17, %v893_v37  ;;  %v925_v48 = vsel %vm887_vm4, %v2490_v11, -inf  ;;  %v2497_v49 = vmul.f32 %v2453_v41, %v771_v23  ;;  %v772_v43 = vmul.f32 %v1945_v9, %v563_v36  ;;  %v1949_v53 = vpop.eup %1948 }
 0x1b6   :  { %1956 = vrsqrt.f32 %v746_v61  ;;  %v901_v13 = vmax.f32 %v899_v27, %v900_v34  ;;  %v911_v47 = vrot.slane %v910_v33, 2  ;;  %v926_v42 = vmax.f32 %v924_v35, %v925_v48  ;;  %v572_v50 = vpop.xlane.xlu0 %571  ;;  %v1951_v45 = vpop.eup %1950 }
 0x1b7   :  { %v895_v55 = vrot.slane %v894_v39, 1  ;;  %v2500_v51 = vmul.f32 %v2453_v41, %v772_v43  ;;  %v775_v52 = vmul.f32 %v1947_v46, %v572_v50  ;;  %v915_v59 = vsel %vm887_vm4, %v2497_v49, -inf }
 0x1b8   :  { %v902_v26 = vrot.slane %v901_v13, 2  ;;  %v912_v57 = vmax.f32 %v910_v33, %v911_v47  ;;  %v927_v58 = vrot.slane %v926_v42, 4  ;;  %v575_v60 = vpop.xlane.xlu1 %574  ;;  %v862_v34 = vrot.slane %v830_v2, %v2344_v21 }
 0x1b9   :  { %v896_v61 = vmax.f32 %v894_v39, %v895_v55  ;;  %v916_v10 = vsel %vm887_vm4, %v2500_v51, -inf  ;;  %v2509_v63 = vmul.f32 %v2462_v54, %v775_v52  ;;  %v776_v41 = vmul.f32 %v1949_v53, %v575_v60 }
 0x1ba   :  { %v903_v0 = vmax.f32 %v901_v13, %v902_v26  ;;  %v913_v1 = vrot.slane %v912_v57, 1  ;;  %v928_v6 = vmax.f32 %v926_v42, %v927_v58  ;;  %v917_v32 = vmax.f32 %v915_v59, %v916_v10  ;;  %v578_v8 = vpop.xlane.xlu0 %577 }
 0x1bb   :  { %v960_v12 = vsub.f32 %v2449_v40, %v896_v61  ;;  %v961_v14 = vsub.f32 %v2455_v44, %v896_v61  ;;  %v933_v16 = vsel %vm887_vm4, %v2509_v63, -inf  ;;  %v2516_v5 = vmul.f32 %v2462_v54, %v776_v41 }
 0x1bc   :  { %v904_v17 = vrot.slane %v903_v0, 1  ;;  %v914_v18 = vmax.f32 %v912_v57, %v913_v1  ;;  %v929_v3 = vrot.slane %v928_v6, 2  ;;  %v918_v22 = vrot.slane %v917_v32, 4  ;;  %v581_v30 = vpop.xlane.xlu1 %580 }
 0x1bd   :  { %v976_v27 = vmul.f32 1.442695, %v960_v12  ;;  %v978_v31 = vmul.f32 1.442695, %v961_v14  ;;  %v934_v28 = vsel %vm887_vm4, %v2516_v5, -inf  ;;  %v777_v19 = vmul.f32 %v1951_v45, %v578_v8 }
 0x1be   :  { %v905_v40 = vmax.f32 %v903_v0, %v904_v17  ;;  %v964_v44 = vsub.f32 %v2471_v7, %v914_v18  ;;  %v965_v37 = vsub.f32 %v2466_v56, %v914_v18  ;;  %v930_v23 = vmax.f32 %v928_v6, %v929_v3  ;;  %v584_v53 = vpop.xlane.xlu0 %583 }
 0x1bf   :  { %1958 = vpow2.f32 %v976_v27  ;;  %v919_v54 = vmax.f32 %v917_v32, %v918_v22  ;;  %v935_v9 = vmax.f32 %v933_v16, %v934_v28  ;;  %v2526_v50 = vmul.f32 %v2469_v4, %v777_v19 }
 0x1c0   :  { %v1953_v33 = vpop.eup %1952  ;;  %1960 = vpow2.f32 %v978_v31  ;;  %v962_v35 = vsub.f32 %v2474_v62, %v905_v40  ;;  %v963_v36 = vsub.f32 %v2478_v25, %v905_v40  ;;  %v984_v39 = vmul.f32 1.442695, %v964_v44  ;;  %v587_v47 = vpop.xlane.xlu1 %586 }
 0x1c1   :  { %v1955_v48 = vpop.eup %1954  ;;  %v986_v43 = vmul.f32 1.442695, %v965_v37  ;;  %v931_v46 = vrot.slane %v930_v23, 1  ;;  %v920_v13 = vrot.slane %v919_v54, 2  ;;  %v936_v7 = vrot.slane %v935_v9, 4 }
 0x1c2   :  { %v980_v56 = vmul.f32 1.442695, %v962_v35  ;;  %v982_v42 = vmul.f32 1.442695, %v963_v36  ;;  %1962 = vpow2.f32 %v984_v39  ;;  %v779_v26 = vmul.f32 %v1953_v33, %v584_v53 }
 0x1c3   :  { %v1957_v55 = vpop.eup %1956  ;;  %1964 = vpow2.f32 %v986_v43  ;;  %v932_v52 = vmax.f32 %v930_v23, %v931_v46  ;;  %v921_v2 = vmax.f32 %v919_v54, %v920_v13  ;;  %v937_v62 = vmax.f32 %v935_v9, %v936_v7 }
 0x1c4   :  { %1966 = vpow2.f32 %v980_v56  ;;  %v778_v25 = vmul.f32 %v1957_v55, %v581_v30  ;;  %v780_v57 = vmul.f32 %v1955_v48, %v587_v47  ;;  %v2533_v41 = vmul.f32 %v862_v34, %v779_v26 }
 0x1c5   :  { %1968 = vpow2.f32 %v982_v42  ;;  %v968_v58 = vsub.f32 %v2488_v29, %v932_v52  ;;  %v969_v59 = vsub.f32 %v2490_v11, %v932_v52  ;;  %v922_v60 = vrot.slane %v921_v2, 1 }
 0x1c6   :  { %v938_v61 = vrot.slane %v937_v62, 2  ;;  %v2531_v10 = vmul.f32 %v2469_v4, %v778_v25  ;;  %v2535_v0 = vmul.f32 %v862_v34, %v780_v57  ;;  %v942_v8 = vsel %vm887_vm4, %v2526_v50, -inf }
 0x1c7   :  { %v992_v1 = vmul.f32 1.442695, %v968_v58  ;;  %v994_v6 = vmul.f32 1.442695, %v969_v59  ;;  %v923_v32 = vmax.f32 %v921_v2, %v922_v60  ;;  %v951_v11 = vsel %vm887_vm4, %v2533_v41, -inf }
 0x1c8   :  { %v939_v45 = vmax.f32 %v937_v62, %v938_v61  ;;  %v943_v29 = vsel %vm887_vm4, %v2531_v10, -inf  ;;  %v952_v4 = vsel %vm887_vm4, %v2535_v0, -inf }
 0x1c9   :  { %1970 = vpow2.f32 %v992_v1  ;;  %v966_v12 = vsub.f32 %v2497_v49, %v923_v32  ;;  %v967_v14 = vsub.f32 %v2500_v51, %v923_v32  ;;  %v944_v16 = vmax.f32 %v942_v8, %v943_v29 }
 0x1ca   :  { %1972 = vpow2.f32 %v994_v6  ;;  %v940_v17 = vrot.slane %v939_v45, 1  ;;  %v953_v18 = vmax.f32 %v951_v11, %v952_v4 }
 0x1cb   :  { %v988_v3 = vmul.f32 1.442695, %v966_v12  ;;  %v990_v22 = vmul.f32 1.442695, %v967_v14  ;;  %v945_v30 = vrot.slane %v944_v16, 4 }
 0x1cc   :  { %v2547_v27 = vpop.eup %1958  ;;  %v941_v31 = vmax.f32 %v939_v45, %v940_v17  ;;  %v954_v28 = vrot.slane %v953_v18, 4 }
 0x1cd   :  { %v2549_v19 = vpop.eup %1960  ;;  %v1008_v40 = vsel %vm887_vm4, %v2547_v27, 0.0  ;;  %1974 = vpow2.f32 %v988_v3  ;;  %v946_v49 = vmax.f32 %v944_v16, %v945_v30 }
 0x1ce   :  { %v1009_v51 = vsel %vm887_vm4, %v2549_v19, 0.0  ;;  %1976 = vpow2.f32 %v990_v22  ;;  %v970_v44 = vsub.f32 %v2509_v63, %v941_v31  ;;  %v971_v37 = vsub.f32 %v2516_v5, %v941_v31 }
 0x1cf   :  { %v2557_v23 = vpop.eup %1962  ;;  %v1010_v54 = vadd.f32 %v1009_v51, %v1008_v40  ;;  %v947_v9 = vrot.slane %v946_v49, 2  ;;  %v955_v34 = vmax.f32 %v953_v18, %v954_v28 }
 0x1d0   :  { %v2559_v33 = vpop.eup %1964  ;;  %v1026_v35 = vsel %vm887_vm4, %v2557_v23, 0.0  ;;  %v996_v36 = vmul.f32 1.442695, %v970_v44  ;;  %v998_v39 = vmul.f32 1.442695, %v971_v37 }
 0x1d1   :  { %v2563_v48 = vpop.eup %1966  ;;  %v1011_v43 = vrot.slane %v1010_v54, 4  ;;  %v1027_v63 = vsel %vm887_vm4, %v2559_v33, 0.0  ;;  %v948_v46 = vmax.f32 %v946_v49, %v947_v9  ;;  %v956_v5 = vrot.slane %v955_v34, 2 }
 0x1d2   :  { %v2567_v13 = vpop.eup %1968  ;;  %v1017_v7 = vsel %vm887_vm4, %v2563_v48, 0.0  ;;  %v1028_v47 = vadd.f32 %v1027_v63, %v1026_v35  ;;  %1978 = vpow2.f32 %v996_v36 }
 0x1d3   :  { %v1018_v56 = vsel %vm887_vm4, %v2567_v13, 0.0  ;;  %1980 = vpow2.f32 %v998_v39  ;;  %v949_v42 = vrot.slane %v948_v46, 1  ;;  %v957_v55 = vmax.f32 %v955_v34, %v956_v5 }
 0x1d4   :  { %v1019_v52 = vadd.f32 %v1018_v56, %v1017_v7  ;;  %v1029_v2 = vrot.slane %v1028_v47, 4  ;;  %v1012_v62 = vadd.f32 %v1011_v43, %v1010_v54 }
 0x1d5   :  { %v950_v53 = vmax.f32 %v948_v46, %v949_v42  ;;  %v958_v25 = vrot.slane %v957_v55, 1 }
 0x1d6   :  { %v2573_v26 = vpop.eup %1970  ;;  %v1020_v57 = vrot.slane %v1019_v52, 4  ;;  %v1013_v58 = vrot.slane %v1012_v62, 2  ;;  %v1030_v59 = vadd.f32 %v1029_v2, %v1028_v47 }
 0x1d7   :  { %v2575_v60 = vpop.eup %1972  ;;  %v1044_v61 = vsel %vm887_vm4, %v2573_v26, 0.0  ;;  %v972_v1 = vsub.f32 %v2526_v50, %v950_v53  ;;  %v973_v6 = vsub.f32 %v2531_v10, %v950_v53  ;;  %v959_v32 = vmax.f32 %v957_v55, %v958_v25 }
 0x1d8   :  { %v1045_v8 = vsel %vm887_vm4, %v2575_v60, 0.0  ;;  %v1014_v45 = vadd.f32 %v1013_v58, %v1012_v62  ;;  %v1021_v29 = vadd.f32 %v1020_v57, %v1019_v52  ;;  %v1031_v11 = vrot.slane %v1030_v59, 2 }
 0x1d9   :  { %v1046_v4 = vadd.f32 %v1045_v8, %v1044_v61  ;;  %v1000_v12 = vmul.f32 1.442695, %v972_v1  ;;  %v1002_v14 = vmul.f32 1.442695, %v973_v6  ;;  %v974_v16 = vsub.f32 %v2533_v41, %v959_v32 }
 0x1da   :  { %v2584_v17 = vpop.eup %1974  ;;  %v975_v18 = vsub.f32 %v2535_v0, %v959_v32  ;;  %v1015_v3 = vrot.slane %v1014_v45, 1  ;;  %v1022_v50 = vrot.slane %v1021_v29, 2  ;;  %v1032_v22 = vadd.f32 %v1031_v11, %v1030_v59 }
 0x1db   :  { %v2587_v10 = vpop.eup %1976  ;;  %v1047_v30 = vrot.slane %v1046_v4, 4  ;;  %v1035_v31 = vsel %vm887_vm4, %v2584_v17, 0.0  ;;  %1982 = vpow2.f32 %v1000_v12  ;;  %v1004_v28 = vmul.f32 1.442695, %v974_v16 }
 0x1dc   :  { %v1036_v40 = vsel %vm887_vm4, %v2587_v10, 0.0  ;;  %1984 = vpow2.f32 %v1002_v14  ;;  %v1006_v41 = vmul.f32 1.442695, %v975_v18  ;;  %v1016_v49 = vadd.f32 %v1015_v3, %v1014_v45 }
 0x1dd   :  { %v1037_v51 = vadd.f32 %v1036_v40, %v1035_v31  ;;  %1986 = vpow2.f32 %v1004_v28  ;;  %v1023_v0 = vadd.f32 %v1022_v50, %v1021_v29  ;;  %v1048_v44 = vadd.f32 %v1047_v30, %v1046_v4 }
 0x1de   :  { %1988 = vpow2.f32 %v1006_v41  ;;  %v1033_v39 = vrot.slane %v1032_v22, 1 }
 0x1df   :  { %v2593_v37 = vpop.eup %1978  ;;  %v1038_v54 = vrot.slane %v1037_v51, 4  ;;  %1990 = vrcp.f32 %v1016_v49  ;;  %v1024_v9 = vrot.slane %v1023_v0, 1  ;;  %v1049_v34 = vrot.slane %v1048_v44, 2 }
 0x1e0   :  { %v2595_v35 = vpop.eup %1980  ;;  %v1053_v36 = vsel %vm887_vm4, %v2593_v37, 0.0  ;;  %v1034_v52 = vadd.f32 %v1033_v39, %v1032_v22 }
 0x1e1   :  { %v1054_v43 = vsel %vm887_vm4, %v2595_v35, 0.0  ;;  %v1025_v63 = vadd.f32 %v1024_v9, %v1023_v0  ;;  %v1050_v46 = vadd.f32 %v1049_v34, %v1048_v44  ;;  %v1039_v5 = vadd.f32 %v1038_v54, %v1037_v51 }
 0x1e2   :  { %v1055_v7 = vadd.f32 %v1054_v43, %v1053_v36 }
 0x1e3   :  { %1992 = vrcp.f32 %v1025_v63  ;;  %v1051_v47 = vrot.slane %v1050_v46, 1  ;;  %v1040_v42 = vrot.slane %v1039_v5, 2 }
 0x1e4   :  { %v1056_v56 = vrot.slane %v1055_v7, 4 }
 0x1e5   :  { %v1052_v55 = vadd.f32 %v1051_v47, %v1050_v46  ;;  %v1041_v25 = vadd.f32 %v1040_v42, %v1039_v5 }
 0x1e6   :  { %v1057_v2 = vadd.f32 %v1056_v56, %v1055_v7 }
 0x1e7   :  { %1994 = vrcp.f32 %v1052_v55  ;;  %v1042_v4 = vrot.slane %v1041_v25, 1  ;;  %v89_v55 = vld [vmem:[#allocation7 + $0x100] sm:$0xff] }
 0x1e8   :  { %v2601_v62 = vpop.eup %1982  ;;  %v1058_v53 = vrot.slane %v1057_v2, 2  ;;  %1996 = vrcp.f32 %v1034_v52  ;;  %v85_v52 = vld [vmem:[#allocation7 + $0xb8] sm:$0xff] }
 0x1e9   :  { %v1985_v57 = vpop.eup %1984  ;;  %v1062_v58 = vsel %vm887_vm4, %v2601_v62, 0.0  ;;  %v1043_v31 = vadd.f32 %v1042_v4, %v1041_v25  ;;  %v74_v25 = vld [vmem:[#allocation7 + $0x10] sm:$0xff]  ;;  %v92_v4 = vld [vmem:[#allocation7 + $0x28] sm:$0xff] }
 0x1ea   :  { %v2605_v59 = vpop.eup %1986  ;;  %v1063_v61 = vsel %vm887_vm4, %v1985_v57, 0.0  ;;  %v1059_v1 = vadd.f32 %v1058_v53, %v1057_v2  ;;  %v84_v2 = vld [vmem:[#allocation7 + $0xb0] sm:$0xff]  ;;  %v79_v53 = vld [vmem:[#allocation7 + $0x60] sm:$0xff] }
 0x1eb   :  { %v1989_v6 = vpop.eup %1988  ;;  %v1064_v32 = vadd.f32 %v1063_v61, %v1062_v58  ;;  %v1071_v8 = vsel %vm887_vm4, %v2605_v59, 0.0  ;;  %v101_v58 = vld [vmem:[#allocation7 + $0x118] sm:$0xff]  ;;  %v99_v61 = vld [vmem:[#allocation7 + $0xd0] sm:$0xff] }
 0x1ec   :  { %v1991_v45 = vpop.eup %1990  ;;  %v1072_v29 = vsel %vm887_vm4, %v1989_v6, 0.0  ;;  %v1060_v11 = vrot.slane %v1059_v1, 1 }
 0x1ed   :  { %v1065_v12 = vrot.slane %v1064_v32, 4  ;;  %v1073_v14 = vadd.f32 %v1072_v29, %v1071_v8  ;;  %v1089_v16 = vmul.f32 %v1991_v45, %v2549_v19  ;;  %v1088_v18 = vmul.f32 %v1991_v45, %v2547_v27  ;;  %v96_v8 = vld [vmem:[#allocation7 + $0x80] sm:$0xff]  ;;  %v95_v45 = vld [vmem:[#allocation7 + $0x78] sm:$0xff]  ;;  %v97_v29 = vld [vmem:[#allocation7 + $0x88] sm:$0xff] }
 0x1ee   :  { %v1061_v3 = vadd.f32 %v1060_v11, %v1059_v1  ;;  %v2629_v1 = vld [vmem:[#allocation10] sm:$0xff]  ;;  %v93_v11 = vld [vmem:[#allocation7 + $0x30] sm:$0xff] }
 0x1ef   :  { %v1074_v50 = vrot.slane %v1073_v14, 4  ;;  %1111 = vperm.xlu1 %1921, %v1089_v16   ;;  %1106 = vperm.xlu0 %1920, %v1088_v18   ;;  %v1066_v22 = vadd.f32 %v1065_v12, %v1064_v32  ;;  %v100_v32 = vld [vmem:[#allocation7 + $0xd8] sm:$0xff] }
 0x1f0   :  { %v1993_v30 = vpop.eup %1992  ;;  %1998 = vrcp.f32 %v1061_v3  ;;  %v94_v12 = vld [vmem:[#allocation7 + $0x38] sm:$0xff] }
 0x1f1   :  { %v1090_v28 = vmul.f32 %v1993_v30, %v2563_v48  ;;  %v1067_v40 = vrot.slane %v1066_v22, 2  ;;  %v1075_v41 = vadd.f32 %v1074_v50, %v1073_v14  ;;  %2000 = vrcp.f32 %v1043_v31  ;;  %v2649_v31 = vld [vmem:[#allocation11] sm:$0xff] }
 0x1f2   :  { %v1091_v19 = vmul.f32 %v1993_v30, %v2567_v13 }
 0x1f3   :  { %1116 = vperm.xlu1 %1921, %v1090_v28   ;;  %v1068_v49 = vadd.f32 %v1067_v40, %v1066_v22  ;;  %v1076_v51 = vrot.slane %v1075_v41, 2  ;;  %v2645_v22 = vld [vmem:[#allocation11 + $0x8] sm:$0xff]  ;;  %v2653_v40 = vld [vmem:[#allocation11 + $0x18] sm:$0xff] }
 0x1f4   :  { %v1995_v0 = vpop.eup %1994 }
 0x1f5   :  { %v1097_v27 = vmul.f32 %v1995_v0, %v2575_v60  ;;  %v1069_v44 = vrot.slane %v1068_v49, 1  ;;  %v1077_v54 = vadd.f32 %v1076_v51, %v1075_v41  ;;  %v1997_v9 = vpop.eup %1996  ;;  %v1096_v46 = vmul.f32 %v1995_v0, %v2573_v26  ;;  %v2659_v51 = vld [vmem:[#allocation11 + $0x10] sm:$0xff] }
 0x1f6   :  { %v1092_v48 = vmul.f32 %v1997_v9, %v2557_v23  ;;  %v1093_v63 = vmul.f32 %v1997_v9, %v2559_v33 }
 0x1f7   :  { %1121 = vperm.xlu1 %1921, %v1091_v19   ;;  %1151 = vperm.xlu0 %1920, %v1097_v27   ;;  %v1070_v34 = vadd.f32 %v1069_v44, %v1068_v49  ;;  %v1078_v36 = vrot.slane %v1077_v54, 1  ;;  %v2663_v19 = vld [vmem:[#allocation11 + $0x28] sm:$0xff]  ;;  %v2667_v44 = vld [vmem:[#allocation11 + $0x20] sm:$0xff] }
 0x1f9   :  { %2002 = vrcp.f32 %v1070_v34  ;;  %v1079_v39 = vadd.f32 %v1078_v36, %v1077_v54 }
 0x1fb   :  { %1126 = vperm.xlu1 %1921, %v1092_v48   ;;  %2004 = vrcp.f32 %v1079_v39 }
 0x1fd   :  { %v1999_v43 = vpop.eup %1998 }
 0x1fe   :  { %v1099_v13 = vmul.f32 %v1999_v43, %v2595_v35  ;;  %v2001_v60 = vpop.eup %2000  ;;  %v1098_v33 = vmul.f32 %v1999_v43, %v2593_v37  ;;  %v75_v37 = vld [vmem:[#allocation7 + $0x18] sm:$0xff] }
 0x1ff   :  { %1131 = vperm.xlu1 %1921, %v1093_v63   ;;  %v1094_v5 = vmul.f32 %v2001_v60, %v2584_v17  ;;  %v1095_v42 = vmul.f32 %v2001_v60, %v2587_v10  ;;  %v90_v17 = vld [vmem:[#allocation7 + $0x108] sm:$0xff] }
 0x200   :  { %1161 = vperm.xlu0 %1920, %v1099_v13   ;;  %293 = vmatprep.subr.mxu1 %v90_v17  ;;  %v80_v10 = vld [vmem:[#allocation7 + $0x68] sm:$0xff] }
 0x201   :  { %294 = vmatpush1.msra.mxu1 %v89_v55 }
 0x202   :  { %295 = vmatprep.subr.mxu1 %v85_v52  ;;  %v2694_v52 = vld [vmem:[#allocation11 + $0x30] sm:$0xff] }
 0x203   :  { %1146 = vperm.xlu1 %1921, %v1096_v46   ;;  %296 = vmatpush1.msra.mxu1 %v84_v2 }
 0x204   :  { %297 = vmatprep.subr.mxu1 %v80_v10 }
 0x205   :  { %298 = vmatpush1.msra.mxu1 %v79_v53 }
 0x206   :  { %v2003_v7 = vpop.eup %2002  ;;  %299 = vmatprep.subr.mxu1 %v75_v37 }
 0x207   :  { %v1101_v47 = vmul.f32 %v2003_v7, %v1985_v57  ;;  %1136 = vperm.xlu1 %1921, %v1094_v5   ;;  %v1100_v35 = vmul.f32 %v2003_v7, %v2601_v62  ;;  %300 = vmatpush1.msra.mxu1 %v74_v25  ;;  %v2625_v62 = vld [vmem:[#allocation2] sm:$0xff]  ;;  %v102_v57 = vld [vmem:[#allocation7 + $0x120] sm:$0xff] }
 0x208   :  { %v2005_v23 = vpop.eup %2004  ;;  %1866 = vmatmul.mubr.msk.f32.vlgmr.msra.gmra.mxu1 %vm135_vm0, %v2625_v62  ;;  %1336 = vmatprep.subr.mxu1 %v102_v57  ;;  %v2681_v5 = vld [vmem:[#allocation11 + $0x40] sm:$0xff]  ;;  %v2701_v25 = vld [vmem:[#allocation11 + $0x38] sm:$0xff] }
 0x209   :  { %1171 = vperm.xlu0 %1920, %v1101_v47   ;;  %v1103_v56 = vmul.f32 %v2005_v23, %v1989_v6  ;;  %v1102_v26 = vmul.f32 %v2005_v23, %v2605_v59  ;;  %v103_v59 = vld [vmem:[#allocation7 + $0x128] sm:$0xff]  ;;  %1376 = vmatprep.mubr.f32.mxu1 %v2629_v1 }
 0x20a   :  { %1337 = vmatpush1.msra.mxu1 %v101_v58  ;;  %1896 = vmatpush3.msra.mxu0 %v103_v59  ;;  %v98_v6 = vld [vmem:[#allocation7 + $0xc8] sm:$0xff] }
 0x20b   :  { %1141 = vperm.xlu1 %1921, %v1095_v42   ;;  %1338 = vmatprep.subr.mxu1 %v99_v61  ;;  %v2685_v23 = vld [vmem:[#allocation11 + $0x48] sm:$0xff] }
 0x20c   :  { %1897 = vmatprep.subr.mxu0 %v2629_v1  ;;  %1339 = vmatpush1.msra.mxu1 %v98_v6 }
 0x20d   :  { %1181 = vperm.xlu0 %1920, %v1103_v56   ;;  %1898 = vmatpush3.msra.mxu0 %v100_v32  ;;  %v2707_v32 = vld [vmem:[#allocation11 + $0x58] sm:$0xff] }
 0x20e   :  { %1340 = vmatprep.subr.mxu1 %v96_v8  ;;  %1899 = vmatprep.subr.mxu0 %v2629_v1 }
 0x20f   :  { %1156 = vperm.xlu1 %1921, %v1098_v33   ;;  %1341 = vmatpush1.msra.mxu1 %v95_v45 }
 0x210   :  { %1900 = vmatpush3.msra.mxu0 %v97_v29  ;;  %1342 = vmatprep.subr.mxu1 %v93_v11 }
 0x211   :  { %1901 = vmatprep.subr.mxu0 %v2629_v1  ;;  %1343 = vmatpush1.msra.mxu1 %v92_v4 }
 0x212   :  { %1902 = vmatpush3.msra.mxu0 %v94_v12 }
 0x213   :  { %1166 = vperm.xlu1 %1921, %v1100_v35  }
 0x217   :  { %1176 = vperm.xlu1 %1921, %v1102_v26  }
 0x26a   :  { %v2635_v14 = vpop.permute.xlu1 %1111  ;;  %v2641_v3 = vpop.permute.xlu0 %1106 }
 0x26b   :  { %v1185_v30 = vmul.f32 %v2645_v22, %v2635_v14  ;;  %v1184_v28 = vmul.f32 %v2649_v31, %v2641_v3 }
 0x26d   :  { %v1201_v9 = vsel %vm135_vm0, %v1185_v30, 0.0  ;;  %v1200_v34 = vsel %vm135_vm0, %v1184_v28, 0.0  ;;  %v2715_v30 = vld [vmem:[#allocation11 + $0x50] sm:$0xff] }
 0x26e   :  { %v2637_v16 = vpop.permute.xlu1 %1116  ;;  %v1202_v13 = vadd.f32 %v1201_v9, %v1200_v34  ;;  %v2720_v34 = vld [vmem:[#allocation11 + $0x68] sm:$0xff] }
 0x26f   :  { %v1186_v0 = vmul.f32 %v2659_v51, %v2637_v16 }
 0x270   :  { %v1203_v35 = vrot.slane %v1202_v13, 4 }
 0x271   :  { %v1209_v63 = vsel %vm135_vm0, %v1186_v0, 0.0 }
 0x272   :  { %v2639_v18 = vpop.permute.xlu1 %1121  ;;  %v2674_v48 = vpop.permute.xlu0 %1151  ;;  %v1204_v58 = vadd.f32 %v1203_v35, %v1202_v13 }
 0x273   :  { %v1187_v41 = vmul.f32 %v2653_v40, %v2639_v18  ;;  %2885 = vst [vmem:[#allocation18_spill] sm:$0xff] %v2674_v48  ;;  %v1193_v56 = vmul.f32 %v2685_v23, %v2674_v48 }
 0x275   :  { %v1210_v36 = vsel %vm135_vm0, %v1187_v41, 0.0  ;;  %v1237_v10 = vsel %vm135_vm0, %v1193_v56, 0.0  ;;  %v1205_v41 = vrot.slane %v1204_v58, 2 }
 0x276   :  { %v2643_v50 = vpop.permute.xlu1 %1126  ;;  %v1211_v60 = vadd.f32 %v1210_v36, %v1209_v63 }
 0x277   :  { %v1188_v54 = vmul.f32 %v2667_v44, %v2643_v50  ;;  %v1206_v35 = vadd.f32 %v1205_v41, %v1204_v58  ;;  %v2741_v58 = vld [vmem:[#allocation11 + $0x70] sm:$0xff] }
 0x278   :  { %v1212_v26 = vrot.slane %v1211_v60, 4  ;;  %2894 = vst [vmem:[#allocation27_spill] sm:$0xff] %v2741_v58 }
 0x279   :  { %v1218_v46 = vsel %vm135_vm0, %v1188_v54, 0.0 }
 0x27a   :  { %v2657_v49 = vpop.permute.xlu1 %1131  ;;  %v1213_v59 = vadd.f32 %v1212_v26, %v1211_v60 }
 0x27b   :  { %v1189_v27 = vmul.f32 %v2663_v19, %v2657_v49  ;;  %v2689_v42 = vpop.permute.xlu0 %1161 }
 0x27c   :  { %2887 = vst [vmem:[#allocation20_spill] sm:$0xff] %v2689_v42  ;;  %v1195_v8 = vmul.f32 %v2707_v32, %v2689_v42  ;;  %v1214_v0 = vrot.slane %v1213_v59, 2 }
 0x27d   :  { %v1219_v39 = vsel %vm135_vm0, %v1189_v27, 0.0 }
 0x27e   :  { %v2677_v43 = vpop.permute.xlu1 %1146  ;;  %v1220_v47 = vadd.f32 %v1219_v39, %v1218_v46  ;;  %v1246_v9 = vsel %vm135_vm0, %v1195_v8, 0.0  ;;  %v1215_v26 = vadd.f32 %v1214_v0, %v1213_v59 }
 0x27f   :  { %2886 = vst [vmem:[#allocation19_spill] sm:$0xff] %v2677_v43  ;;  %v1192_v7 = vmul.f32 %v2681_v5, %v2677_v43 }
 0x280   :  { %v1221_v55 = vrot.slane %v1220_v47, 4 }
 0x281   :  { %v1236_v17 = vsel %vm135_vm0, %v1192_v7, 0.0 }
 0x282   :  { %v2691_v33 = vpop.permute.xlu1 %1136  ;;  %v1238_v37 = vadd.f32 %v1237_v10, %v1236_v17  ;;  %v1222_v6 = vadd.f32 %v1221_v55, %v1220_v47  ;;  %v2729_v47 = vld [vmem:[#allocation11 + $0x60] sm:$0xff] }
 0x283   :  { %v1190_v2 = vmul.f32 %v2694_v52, %v2691_v33  ;;  %2892 = vst [vmem:[#allocation25_spill] sm:$0xff] %v2729_v47 }
 0x284   :  { %v2705_v61 = vpop.permute.xlu0 %1171  ;;  %v1239_v12 = vrot.slane %v1238_v37, 4  ;;  %v1223_v54 = vrot.slane %v1222_v6, 2 }
 0x285   :  { %2888 = vst [vmem:[#allocation21_spill] sm:$0xff] %v2705_v61  ;;  %v1227_v45 = vsel %vm135_vm0, %v1190_v2, 0.0  ;;  %v1197_v36 = vmul.f32 %v2720_v34, %v2705_v61 }
 0x286   :  { %v2699_v53 = vpop.permute.xlu1 %1141  ;;  %v1240_v7 = vadd.f32 %v1239_v12, %v1238_v37  ;;  %v1224_v2 = vadd.f32 %v1223_v54, %v1222_v6  ;;  %v1216_v6 = vrot.slane %v1215_v26, 1 }
 0x287   :  { %v1191_v57 = vmul.f32 %v2701_v25, %v2699_v53  ;;  %v1255_v10 = vsel %vm135_vm0, %v1197_v36, 0.0 }
 0x288   :  { %v2725_v63 = vpop.permute.xlu0 %1181  ;;  %v1225_v54 = vrot.slane %v1224_v2, 1 }
 0x289   :  { %v1228_v29 = vsel %vm135_vm0, %v1191_v57, 0.0  ;;  %2890 = vst [vmem:[#allocation23_spill] sm:$0xff] %v2725_v63  ;;  %v2734_v57 = vld [vmem:[#allocation11 + $0x78] sm:$0xff] }
 0x28a   :  { %v1229_v11 = vadd.f32 %v1228_v29, %v1227_v45  ;;  %v2713_v4 = vpop.permute.xlu1 %1156  ;;  %v1199_v8 = vmul.f32 %v2734_v57, %v2725_v63 }
 0x28b   :  { %2889 = vst [vmem:[#allocation22_spill] sm:$0xff] %v2713_v4  ;;  %v1194_v28 = vmul.f32 %v2715_v30, %v2713_v4 }
 0x28c   :  { %v1230_v27 = vrot.slane %v1229_v11, 4 }
 0x28d   :  { %v1245_v39 = vsel %vm135_vm0, %v1194_v28, 0.0  ;;  %v1241_v28 = vrot.slane %v1240_v7, 2 }
 0x28e   :  { %v1231_v13 = vadd.f32 %v1230_v27, %v1229_v11  ;;  %v1247_v60 = vadd.f32 %v1246_v9, %v1245_v39  ;;  %v2727_v46 = vpop.permute.xlu1 %1166  ;;  %v1207_v27 = vrot.slane %v1206_v35, 1  ;;  %v1264_v9 = vsel %vm135_vm0, %v1199_v8, 0.0 }
 0x28f   :  { %2891 = vst [vmem:[#allocation24_spill] sm:$0xff] %v2727_v46  ;;  %v1196_v56 = vmul.f32 %v2729_v47, %v2727_v46 }
 0x290   :  { %v1232_v17 = vrot.slane %v1231_v13, 2  ;;  %v1248_v55 = vrot.slane %v1247_v60, 4  ;;  %v1208_v63 = vadd.f32 %v1207_v27, %v1206_v35 }
 0x291   :  { %v1254_v45 = vsel %vm135_vm0, %v1196_v56, 0.0 }
 0x292   :  { %v1233_v37 = vadd.f32 %v1232_v17, %v1231_v13  ;;  %v1249_v29 = vadd.f32 %v1248_v55, %v1247_v60  ;;  %v1256_v11 = vadd.f32 %v1255_v10, %v1254_v45  ;;  %v2739_v12 = vpop.permute.xlu1 %1176  ;;  %v1242_v17 = vadd.f32 %v1241_v28, %v1240_v7 }
 0x293   :  { %2893 = vst [vmem:[#allocation26_spill] sm:$0xff] %v2739_v12  ;;  %v1198_v59 = vmul.f32 %v2741_v58, %v2739_v12  ;;  %v1217_v55 = vadd.f32 %v1216_v6, %v1215_v26  ;;  %v1226_v12 = vadd.f32 %v1225_v54, %v1224_v2  ;;  %v2752_v54 = vsub.s32 1, %v2339_v15 }
 0x294   :  { %v1250_v41 = vrot.slane %v1249_v29, 2  ;;  %v1257_v0 = vrot.slane %v1256_v11, 4  ;;  %v1234_v39 = vrot.slane %v1233_v37, 1  ;;  %v1243_v48 = vrot.slane %v1242_v17, 1 }
 0x295   :  { %v1263_v36 = vsel %vm135_vm0, %v1198_v59, 0.0  ;;  %v1297_v8 = vsel %vm1296_vm5, %v1217_v55, %v1208_v63  ;;  %v106_v63 = vld [vmem:[#allocation7 + $0x90] sm:$0xff] }
 0x296   :  { %v1251_v13 = vadd.f32 %v1250_v41, %v1249_v29  ;;  %v1258_v60 = vadd.f32 %v1257_v0, %v1256_v11  ;;  %v1265_v56 = vadd.f32 %v1264_v9, %v1263_v36  ;;  %v1235_v61 = vadd.f32 %v1234_v39, %v1233_v37  ;;  %v116_v9 = vld [vmem:[#allocation8 + $0x1] ss:$8 sm:$0x7] }
 0x297   :  { %v1299_v29 = vsel %vm1298_vm6, %v1226_v12, %v1297_v8  ;;  %v1244_v26 = vadd.f32 %v1243_v48, %v1242_v17  ;;  %v110_v48 = vld [vmem:[#allocation7 + $0x130] sm:$0xff]  ;;  %v104_v12 = vld [vmem:[#allocation7 + $0x40] sm:$0xff]  ;;  %v177_v36 = vrot.slane %v2341_v20, %v2752_v54  ;;  %v1276_v39 = vrot.slane %v116_v9, %v2344_v21 }
 0x298   :  { %v1259_v10 = vrot.slane %v1258_v60, 2  ;;  %v1266_v45 = vrot.slane %v1265_v56, 4  ;;  %v1252_v46 = vrot.slane %v1251_v13, 1  ;;  %v1301_v7 = vsel %vm1300_vm7, %v1235_v61, %v1299_v29  ;;  %v108_v61 = vld [vmem:[#allocation7 + $0xe0] sm:$0xff] }
 0x299   :  { %v1303_v2 = vsel %vm1302_vm8, %v1244_v26, %v1301_v7  ;;  %v267_v55 = vadd.f32 %v2355_v38, %v177_v36  ;;  %v184_v38 = vsub.s32 3, %v2339_v15 }
 0x29a   :  { %v1260_v42 = vadd.f32 %v1259_v10, %v1258_v60  ;;  %v1267_v4 = vadd.f32 %v1266_v45, %v1265_v56  ;;  %v1253_v11 = vadd.f32 %v1252_v46, %v1251_v13  ;;  %v105_v46 = vld [vmem:[#allocation7 + $0x48] sm:$0xff]  ;;  %v180_v60 = vsub.s32 2, %v2339_v15 }
 0x29b   :  { %v1280_v45 = vrot.slane %v116_v9, %v2752_v54 }
 0x29c   :  { %v1261_v59 = vrot.slane %v1260_v42, 1  ;;  %v1268_v43 = vrot.slane %v1267_v4, 2  ;;  %v1305_v6 = vsel %vm1304_vm9, %v1253_v11, %v1303_v2  ;;  %v181_v29 = vrot.slane %v2341_v20, %v180_v60 }
 0x29e   :  { %v1269_v41 = vadd.f32 %v1268_v43, %v1267_v4  ;;  %v1262_v28 = vadd.f32 %v1261_v59, %v1260_v42  ;;  %v111_v43 = vld [vmem:[#allocation7 + $0x138] sm:$0xff]  ;;  %v109_v42 = vld [vmem:[#allocation7 + $0xe8] sm:$0xff] }
 0x29f   :  { %1512 = vmatprep.subr.mxu1 %v111_v43  ;;  %v107_v4 = vld [vmem:[#allocation7 + $0x98] sm:$0xff] }
 0x2a0   :  { %v1270_v35 = vrot.slane %v1269_v41, 1  ;;  %v1307_v0 = vsel %vm1306_vm10, %v1262_v28, %v1305_v6 }
 0x2a2   :  { %v1271_v37 = vadd.f32 %v1270_v35, %v1269_v41 }
 0x2a4   :  { %v1309_v27 = vsel %vm1308_vm11, %v1271_v37, %v1307_v0  ;;  %v185_v0 = vrot.slane %v2341_v20, %v184_v38 }
 0x2a5   :  { %1868 = vmatmul.mubr.msk.f32.vlgmr.msra.gmra.mxu1 %vm135_vm0, %v1309_v27  ;;  %1831 = vst.msk [vmem:[#allocation10 + $0x10] sm:$0xff] %vm135_vm0, %v1309_v27  ;;  %1904 = vmatmul.mubr.msk.f32.vlgmr.msra.gmra.mxu0 %vm135_vm0, %v1309_v27  ;;  %v1284_v27 = vrot.slane %v116_v9, %v180_v60 }
 0x2a6   :  { %1552 = vmatprep.mubr.f32.mxu1 %v2629_v1  ;;  %1513 = vmatpush1.msra.mxu1 %v110_v48 }
 0x2a7   :  { %1514 = vmatprep.subr.mxu1 %v109_v42 }
 0x2a8   :  { %1515 = vmatpush1.msra.mxu1 %v108_v61 }
 0x2a9   :  { %1516 = vmatprep.subr.mxu1 %v107_v4 }
 0x2aa   :  { %1517 = vmatpush1.msra.mxu1 %v106_v63 }
 0x2ab   :  { %1518 = vmatprep.subr.mxu1 %v105_v46 }
 0x2ac   :  { %1519 = vmatpush1.msra.mxu1 %v104_v12 }
 0x2c8   :  { %v335_v1 = vpop.f32.mrf.mxu1 }
 0x2c9   :  { %v336_v26 = vadd.f32 %v335_v1, %v181_v29 }
 0x2ca   :  { %v337_v13 = vpop.f32.mrf.mxu1 }
 0x2cb   :  { %v338_v48 = vadd.f32 %v337_v13, %v185_v0 }
 0x365   :  { %v1378_v56 = vpop.f32.mrf.mxu1  ;;  %v1449_v17 = vpop.f32.mrf.mxu0 }
 0x366   :  { %v1379_v10 = vadd.f32 %v1378_v56, %v1276_v39  ;;  %v1450_v61 = vadd.f32 %v1449_v17, %v1284_v27 }
 0x367   :  { %v1380_v8 = vpop.f32.mrf.mxu1  ;;  %v1905_v59 = vpop.f32.mrf.mxu0 }
 0x368   :  { %v1453_v11 = vadd.f32 %v1379_v10, %v267_v55  ;;  %v1381_v7 = vadd.f32 %v1380_v8, %v1280_v45 }
 0x36a   :  { %v1870_v41 = vmul.f32 -1.442695, %v1453_v11  ;;  %v1460_v28 = vadd.f32 %v1381_v7, %v336_v26 }
 0x36c   :  { %2006 = vpow2.f32 %v1870_v41  ;;  %v1871_v35 = vmul.f32 -1.442695, %v1460_v28 }
 0x36e   :  { %2008 = vpow2.f32 %v1871_v35 }
 0x379   :  { %v2007_v2 = vpop.eup %2006 }
 0x37a   :  { %v1457_v37 = vadd.f32 1.0, %v2007_v2 }
 0x37b   :  { %v2009_v6 = vpop.eup %2008 }
 0x37c   :  { %2010 = vrcp.f32 %v1457_v37  ;;  %v1464_v43 = vadd.f32 1.0, %v2009_v6 }
 0x37e   :  { %2012 = vrcp.f32 %v1464_v43 }
 0x389   :  { %v2011_v42 = vpop.eup %2010 }
 0x38a   :  { %v1467_v4 = vmul.f32 %v2011_v42, %v338_v48 }
 0x38b   :  { %v2013_v46 = vpop.eup %2012 }
 0x38c   :  { %v1468_v63 = vadd.f32 %v1467_v4, %v1450_v61  ;;  %v1470_v12 = vsub.f32 1.0, %v2013_v46  ;;  %v1472_v39 = vmul.f32 %v2625_v62, %v2013_v46 }
 0x38e   :  { %2014 = vtanh.f32 %v1468_v63 }
 0x39b   :  { %v2015_v1 = vpop.eup %2014 }
 0x39c   :  { %v1471_v36 = vmul.f32 %v2015_v1, %v1470_v12 }
 0x39e   :  { %v1473_v56 = vadd.f32 %v1472_v39, %v1471_v36 }
 0x3a0   :  { %1872 = vmatmul.mubr.msk.f32.vlgmr.msra.gmra.mxu1 %vm135_vm0, %v1473_v56  ;;  %1828 = vst.msk [vmem:[#allocation10] sm:$0xff] %vm135_vm0, %v1473_v56 }
 0x3a1   :  { %2129 = shalt.err (!%p2126_p10)
}
 0x3a2   :  { %1841 = dma.vmem_to_hbm [thread:$0]  %s1839_s3, 384, %s2873_s4, [#allocation4]   ;;  %v118_v15 = vld [vmem:[#allocation8 + $0x2] ss:$8 sm:$0x3] }
 0x3a3   :  { %v1478_v20 = vrot.slane %v118_v15, %v2344_v21  ;;  %v1482_v60 = vrot.slane %v118_v15, %v2752_v54  ;;  %s2181_s4 = smov [#allocation11]  }
 0x3a4   :  { %s1847_s18 = sshll.u32 %s2181_s4, 4  ;;  %s1848_s18 = int_to_ptr.vmem [resolvable:$true] %s1847_s18 }
 0x3a5   :  { %s2138_s19 = scalar_lea.vmem %s1848_s18, 2048  ;;  %p2143_p12 = scmp.lt.s32.totalorder %s1848_s18, %s1848_s18 }
 0x3a6   :  { %p2139_p11 = scmp.ne.s32.totalorder %s1848_s18, %s2138_s19  ;;  %p2144_p13 = scmp.lt.s32.totalorder %s2138_s19, %s2138_s19 }
 0x3a8   :  { %p2145_p0 = por %p2144_p13, %p2143_p12 }
 0x3aa   :  { %p2146_p1 = pnand %p2145_p0, %p2139_p11 }
 0x460   :  { %v1554_v62 = vpop.f32.mrf.mxu1 }
 0x461   :  { %v1555_v9 = vadd.f32 %v1554_v62, %v1478_v20 }
 0x462   :  { %v1556_v17 = vpop.f32.mrf.mxu1 }
 0x463   :  { %v1873_v13 = vmul.f32 -1.442695, %v1555_v9  ;;  %v1557_v55 = vadd.f32 %v1556_v17, %v1482_v60 }
 0x465   :  { %2016 = vpow2.f32 %v1873_v13  ;;  %v1672_v8 = vcombine.high %v1557_v55, %v1557_v55  ;;  %v1679_v59 = vrot.slane %v1557_v55, %v2349_v24 }
 0x467   :  { %v1686_v29 = vrot.slane %v1672_v8, %v2349_v24  ;;  %v1687_v11 = vcombine.high %v1679_v59, %v1679_v59  ;;  %v1695_v7 = vrot.slane %v1679_v59, %v2349_v24 }
 0x469   :  { %v1688_v41 = vcombine.high %v1686_v29, %v1686_v29  ;;  %v1709_v26 = vrot.slane %v1687_v11, %v2349_v24  ;;  %v1702_v28 = vrot.slane %v1686_v29, %v2349_v24  ;;  %v1717_v2 = vcombine.high %v1695_v7, %v1695_v7 }
 0x46a   :  { %v1724_v61 = vrot.slane %v1695_v7, %v2344_v21 }
 0x46b   :  { %v1716_v54 = vrot.slane %v1688_v41, %v2349_v24  ;;  %v1719_v37 = vcombine.high %v1709_v26, %v1709_v26  ;;  %v1718_v0 = vcombine.high %v1702_v28, %v1702_v28  ;;  %v1728_v4 = vrot.slane %v1709_v26, %v2344_v21 }
 0x46c   :  { %v1732_v63 = vrot.slane %v1717_v2, %v2344_v21  ;;  %v1740_v12 = vrot.slane %v1702_v28, %v2344_v21 }
 0x46d   :  { %v1720_v27 = vcombine.high %v1716_v54, %v1716_v54  ;;  %v1736_v46 = vrot.slane %v1719_v37, %v2344_v21  ;;  %v1744_v20 = vrot.slane %v1716_v54, %v2344_v21  ;;  %v1748_v62 = vrot.slane %v1718_v0, %v2344_v21 }
 0x46f   :  { %v1752_v9 = vrot.slane %v1720_v27, %v2344_v21 }
 0x472   :  { %v2017_v10 = vpop.eup %2016 }
 0x473   :  { %v1562_v45 = vadd.f32 1.0, %v2017_v10 }
 0x475   :  { %2018 = vrcp.f32 %v1562_v45 }
 0x482   :  { %v2019_v35 = vpop.eup %2018 }
 0x483   :  { %v1566_v38 = vcombine.high %v2019_v35, %v2019_v35  ;;  %v1573_v6 = vrot.slane %v2019_v35, %v2349_v24 }
 0x485   :  { %v1580_v43 = vrot.slane %v1566_v38, %v2349_v24  ;;  %v1581_v48 = vcombine.high %v1573_v6, %v1573_v6  ;;  %v1589_v42 = vrot.slane %v1573_v6, %v2349_v24 }
 0x487   :  { %v1582_v1 = vcombine.high %v1580_v43, %v1580_v43  ;;  %v1596_v36 = vrot.slane %v1580_v43, %v2349_v24  ;;  %v1603_v39 = vrot.slane %v1581_v48, %v2349_v24  ;;  %v1611_v56 = vcombine.high %v1589_v42, %v1589_v42 }
 0x488   :  { %v1618_v15 = vrot.slane %v1589_v42, %v2344_v21 }
 0x489   :  { %v1610_v13 = vrot.slane %v1582_v1, %v2349_v24  ;;  %v1612_v60 = vcombine.high %v1596_v36, %v1596_v36  ;;  %v1613_v17 = vcombine.high %v1603_v39, %v1603_v39  ;;  %v1622_v55 = vrot.slane %v1603_v39, %v2344_v21 }
 0x48a   :  { %v1626_v10 = vrot.slane %v1611_v56, %v2344_v21  ;;  %v1634_v45 = vrot.slane %v1596_v36, %v2344_v21  ;;  %v1655_v8 = vmul.f32 %v2649_v31, %v1618_v15  ;;  %v1656_v59 = vmul.f32 %v2645_v22, %v1618_v15 }
 0x48b   :  { %v1614_v29 = vcombine.high %v1610_v13, %v1610_v13  ;;  %v1630_v11 = vrot.slane %v1613_v17, %v2344_v21  ;;  %v1638_v41 = vrot.slane %v1610_v13, %v2344_v21  ;;  %v1642_v7 = vrot.slane %v1612_v60, %v2344_v21 }
 0x48c   :  { %v1657_v24 = vmul.f32 %v2659_v51, %v1622_v55  ;;  %v1658_v26 = vmul.f32 %v2653_v40, %v1622_v55  ;;  %v1659_v28 = vmul.f32 %v2667_v44, %v1626_v10  ;;  %v1660_v54 = vmul.f32 %v2663_v19, %v1626_v10 }
 0x48d   :  { %v1646_v35 = vrot.slane %v1614_v29, %v2344_v21  ;;  %v1661_v2 = vmul.f32 %v2694_v52, %v1630_v11  ;;  %v1662_v37 = vmul.f32 %v2701_v25, %v1630_v11  ;;  %v1663_v38 = vmul.f32 %v2681_v5, %v1634_v45 }
 0x48e   :  { %v1664_v6 = vmul.f32 %v2685_v23, %v1634_v45  ;;  %v1665_v0 = vmul.f32 %v2715_v30, %v1638_v41  ;;  %v1666_v27 = vmul.f32 %v2707_v32, %v1638_v41  ;;  %v1667_v43 = vmul.f32 %v2729_v47, %v1642_v7 }
 0x48f   :  { %v1668_v48 = vmul.f32 %v2720_v34, %v1642_v7  ;;  %v1669_v42 = vmul.f32 %v2741_v58, %v1646_v35  ;;  %v1670_v21 = vmul.f32 %v2734_v57, %v1646_v35  ;;  %v1761_v1 = vsub.f32 %v1655_v8, %v1724_v61  ;;  %v2895_v8 = vld [vmem:[#allocation19_spill] sm:$0xff] }
 0x490   :  { %v1762_v36 = vsub.f32 %v1656_v59, %v1724_v61  ;;  %v1763_v39 = vsub.f32 %v1657_v24, %v1728_v4  ;;  %v1764_v56 = vsub.f32 %v1658_v26, %v1728_v4  ;;  %v1765_v15 = vsub.f32 %v1659_v28, %v1732_v63  ;;  %v2896_v59 = vld [vmem:[#allocation18_spill] sm:$0xff]  ;;  %v2898_v26 = vld [vmem:[#allocation20_spill] sm:$0xff] }
 0x491   :  { %v1766_v13 = vsub.f32 %v1660_v54, %v1732_v63  ;;  %v1767_v60 = vsub.f32 %v1661_v2, %v1736_v46  ;;  %v1768_v17 = vsub.f32 %v1662_v37, %v1736_v46  ;;  %v1769_v55 = vsub.f32 %v1663_v38, %v1740_v12  ;;  %v2897_v24 = vld [vmem:[#allocation22_spill] sm:$0xff]  ;;  %v2899_v28 = vld [vmem:[#allocation24_spill] sm:$0xff]  ;;  %v2900_v54 = vld [vmem:[#allocation21_spill] sm:$0xff] }
 0x492   :  { %v1770_v10 = vsub.f32 %v1664_v6, %v1740_v12  ;;  %v1771_v45 = vsub.f32 %v1665_v0, %v1744_v20  ;;  %v1772_v29 = vsub.f32 %v1666_v27, %v1744_v20  ;;  %v1773_v11 = vsub.f32 %v1667_v43, %v1748_v62  ;;  %v2901_v2 = vld [vmem:[#allocation26_spill] sm:$0xff]  ;;  %v2902_v37 = vld [vmem:[#allocation23_spill] sm:$0xff] }
 0x493   :  { %v1774_v41 = vsub.f32 %v1668_v48, %v1748_v62  ;;  %v1775_v47 = vsub.f32 %v1669_v42, %v1752_v9  ;;  %v1776_v7 = vsub.f32 %v1670_v21, %v1752_v9  ;;  %v1777_v58 = vmul.f32 %v1761_v1, %v2641_v3 }
 0x494   :  { %v1778_v35 = vmul.f32 %v1762_v36, %v2635_v14  ;;  %v1779_v61 = vmul.f32 %v1763_v39, %v2637_v16  ;;  %v1780_v4 = vmul.f32 %v1764_v56, %v2639_v18  ;;  %v1781_v63 = vmul.f32 %v1765_v15, %v2643_v50 }
 0x495   :  { %v1782_v46 = vmul.f32 %v1766_v13, %v2657_v49  ;;  %v1783_v12 = vmul.f32 %v1767_v60, %v2691_v33  ;;  %v1784_v20 = vmul.f32 %v1768_v17, %v2699_v53  ;;  %v1785_v62 = vmul.f32 %v1769_v55, %v2895_v8 }
 0x496   :  { %v1786_v9 = vmul.f32 %v1770_v10, %v2896_v59  ;;  %v1787_v3 = vmul.f32 %v1771_v45, %v2897_v24  ;;  %v1788_v14 = vmul.f32 %v1772_v29, %v2898_v26  ;;  %v1789_v16 = vmul.f32 %v1773_v11, %v2899_v28 }
 0x497   :  { %v1790_v18 = vmul.f32 %v1774_v41, %v2900_v54  ;;  %v1791_v50 = vmul.f32 %v1775_v47, %v2901_v2  ;;  %v1792_v49 = vmul.f32 %v1776_v7, %v2902_v37  ;;  %v1793_v33 = vsub.f32 %v2649_v31, %v1777_v58 }
 0x498   :  { %v1794_v53 = vsub.f32 %v2645_v22, %v1778_v35  ;;  %v1795_v38 = vsub.f32 %v2659_v51, %v1779_v61  ;;  %v1796_v6 = vsub.f32 %v2653_v40, %v1780_v4  ;;  %v1797_v0 = vsub.f32 %v2667_v44, %v1781_v63  ;;  %v2903_v51 = vld [vmem:[#allocation25_spill] sm:$0xff] }
 0x499   :  { %v1798_v27 = vsub.f32 %v2663_v19, %v1782_v46  ;;  %v1799_v43 = vsub.f32 %v2694_v52, %v1783_v12  ;;  %v1800_v47 = vsub.f32 %v2701_v25, %v1784_v20  ;;  %v1801_v48 = vsub.f32 %v2681_v5, %v1785_v62  ;;  %1809 = vst.msk [vmem:[#allocation11] sm:$0xff] %vm135_vm0, %v1793_v33  ;;  %v2904_v5 = vld [vmem:[#allocation27_spill] sm:$0xff] }
 0x49a   :  { %v1802_v22 = vsub.f32 %v2685_v23, %v1786_v9  ;;  %v1803_v31 = vsub.f32 %v2715_v30, %v1787_v3  ;;  %v1804_v40 = vsub.f32 %v2707_v32, %v1788_v14  ;;  %v1805_v44 = vsub.f32 %v2903_v51, %v1789_v16  ;;  %1810 = vst.msk [vmem:[#allocation11 + $0x8] sm:$0xff] %vm135_vm0, %v1794_v53 }
 0x49b   :  { %1811 = vst.msk [vmem:[#allocation11 + $0x10] sm:$0xff] %vm135_vm0, %v1795_v38  ;;  %1812 = vst.msk [vmem:[#allocation11 + $0x18] sm:$0xff] %vm135_vm0, %v1796_v6  ;;  %v1806_v19 = vsub.f32 %v2720_v34, %v1790_v18  ;;  %v1807_v52 = vsub.f32 %v2904_v5, %v1791_v50  ;;  %v1808_v23 = vsub.f32 %v2734_v57, %v1792_v49 }
 0x49c   :  { %1813 = vst.msk [vmem:[#allocation11 + $0x20] sm:$0xff] %vm135_vm0, %v1797_v0  ;;  %1814 = vst.msk [vmem:[#allocation11 + $0x28] sm:$0xff] %vm135_vm0, %v1798_v27 }
 0x49d   :  { %1815 = vst.msk [vmem:[#allocation11 + $0x30] sm:$0xff] %vm135_vm0, %v1799_v43  ;;  %1816 = vst.msk [vmem:[#allocation11 + $0x38] sm:$0xff] %vm135_vm0, %v1800_v47 }
 0x49e   :  { %1817 = vst.msk [vmem:[#allocation11 + $0x40] sm:$0xff] %vm135_vm0, %v1801_v48  ;;  %1818 = vst.msk [vmem:[#allocation11 + $0x48] sm:$0xff] %vm135_vm0, %v1802_v22 }
 0x49f   :  { %1819 = vst.msk [vmem:[#allocation11 + $0x50] sm:$0xff] %vm135_vm0, %v1803_v31  ;;  %1820 = vst.msk [vmem:[#allocation11 + $0x58] sm:$0xff] %vm135_vm0, %v1804_v40 }
 0x4a0   :  { %1821 = vst.msk [vmem:[#allocation11 + $0x60] sm:$0xff] %vm135_vm0, %v1805_v44  ;;  %1822 = vst.msk [vmem:[#allocation11 + $0x68] sm:$0xff] %vm135_vm0, %v1806_v19 }
 0x4a1   :  { %1823 = vst.msk [vmem:[#allocation11 + $0x70] sm:$0xff] %vm135_vm0, %v1807_v52  ;;  %1824 = vst.msk [vmem:[#allocation11 + $0x78] sm:$0xff] %vm135_vm0, %v1808_v23 }
 0x4a2   :  { %2149 = shalt.err (!%p2146_p1)
}
 0x4a3   :  { %1853 = dma.vmem_to_hbm [thread:$0]  %s1848_s18, 2048, %s2874_s5, [#allocation12], %s2169_s21, %s2169_s21, %s2170_s22  }
 0x4a4   :  { %2164 = dma.done.wait [#allocation4], 384  }
 0x4a5   :  { %2165 = vsyncadd [#allocation4], 4294966912 }
 0x4a6   :  { %2166 = dma.done.wait [#allocation12], 2048  }
 0x4a7   :  { %2167 = vsyncadd [#allocation12], 4294965248 }
 0x4a8   :  { %1860 = vsyncpa [#allocation3], 1 }
 0x4a9   :  { %1861 = vsyncpa [#allocation6], 1 }
 0x4aa   :  { %1862 = vsyncpa [#allocation9], 1 }
 0x4ab   :  { %1863 = vsyncpa [#allocation4], 1 }
 0x4ac   :  { %1864 = vsyncpa [#allocation12], 1 }

</bundles_post_ra>
